<compile_context>
chip_gen: v7x
topology: tpu7x:2x2x1
jax: 0.10.0
libtpu: 0.0.40
codegen_flags: <defaults>
</compile_context>

<pallas_src>
import functools

import jax
import jax.numpy as jnp
from jax import lax
from jax.experimental import pallas as pl
from jax.experimental.pallas import tpu as pltpu

_VMEM_LIMIT = 44 * 1024 * 1024          # v7x-safe (64 MiB physical per TC)
_PARALLEL = pltpu.CompilerParams(
    dimension_semantics=("parallel",),
    vmem_limit_bytes=_VMEM_LIMIT,
)
_BN_EPS = 1e-5


def _round_up(a, b):
    return (a + b - 1) // b * b


# ----------------------------------------------------------------------------
# Pallas kernels
# ----------------------------------------------------------------------------
def _mm_kernel(x_ref, w_ref, b_ref, o_ref, *, relu):
    acc = jnp.dot(x_ref[...], w_ref[...], preferred_element_type=jnp.float32)
    acc = acc + b_ref[...]
    if relu:
        acc = jnp.maximum(acc, 0.0)
    o_ref[...] = acc.astype(o_ref.dtype)


def _mm_res_kernel(x_ref, w_ref, b_ref, r_ref, o_ref, *, relu):
    acc = jnp.dot(x_ref[...], w_ref[...], preferred_element_type=jnp.float32)
    acc = acc + b_ref[...] + r_ref[...].astype(jnp.float32)
    if relu:
        acc = jnp.maximum(acc, 0.0)
    o_ref[...] = acc.astype(o_ref.dtype)


def _fused_conv_kernel(*refs, k, stride, Ho, Wo, relu, has_res, nparts):
    """Direct conv: padded image resident in VMEM, k*k taps gathered in-kernel.

    refs = x parts (nparts of them: full image for s=1, even/odd columns for
    s=2), weights (k*k, Cin, Cout), bias (1, Cout), optional residual
    (Ho, Wo, Cout), output (Ho, Wo, Cout).
    """
    xs = refs[:nparts]
    w_ref = refs[nparts]
    b_ref = refs[nparts + 1]
    r_ref = refs[nparts + 2] if has_res else None
    o_ref = refs[-1]
    cout = o_ref.shape[-1]
    bias = b_ref[...]                       # loop-invariant: load once, f32 (1, Cout)

    def row_body(ho, carry):
        acc = jnp.zeros((Wo, cout), jnp.float32)
        for ky in range(k):
            h = ho * stride + ky
            for kx in range(k):
                tap = xs[kx % nparts][h, pl.ds(kx // nparts, Wo), :]   # (Wo, Cin)
                acc = acc + jnp.dot(tap, w_ref[ky * k + kx],
                                    preferred_element_type=jnp.float32)
        acc = acc + bias
        if has_res:
            acc = acc + r_ref[ho].astype(jnp.float32)
        if relu:
            acc = jnp.maximum(acc, 0.0)
        o_ref[pl.ds(ho, 1)] = acc[None].astype(o_ref.dtype)
        return carry

    lax.fori_loop(0, Ho, row_body, 0)


def _maxpool_kernel(xe_ref, xo_ref, o_ref, *, Ho, Wo):
    """3x3 / stride 2 max pool; -inf padded even/odd column halves in VMEM."""
    xs = (xe_ref, xo_ref)

    def row_body(ho, carry):
        m = None
        for ky in range(3):
            h = ho * 2 + ky
            for kx in range(3):
                tap = xs[kx % 2][h, pl.ds(kx // 2, Wo), :]
                m = tap if m is None else jnp.maximum(m, tap)
        o_ref[pl.ds(ho, 1)] = m[None]
        return carry

    lax.fori_loop(0, Ho, row_body, 0)


def _avgpool_kernel(x_ref, o_ref):
    o_ref[...] = jnp.mean(x_ref[...].astype(jnp.float32), axis=1, keepdims=True)


# ----------------------------------------------------------------------------
# Pallas wrappers
# ----------------------------------------------------------------------------
def _pick_tile_m(K, N, has_res):
    """Largest M tile whose double-buffered working set fits a v7x-safe budget."""
    budget = 24 * 1024 * 1024
    fixed = 2 * K * N * 2 + 2 * N * 4            # bf16 weights (x2 buffers) + f32 bias
    per_row = 2 * (K * 2 + N * 2 + (N * 2 if has_res else 0))
    for tm in (512, 256, 128, 64, 32, 16, 8):
        if fixed + tm * per_row <= budget:
            return tm
    return 8


def matmul_bias(x, w, b, residual=None, relu=False, out_dtype=jnp.bfloat16):
    """out = act(x @ w + b [+ residual]); bf16 operands, f32 accumulation."""
    M, K = x.shape
    N = w.shape[1]
    x = x.astype(jnp.bfloat16)
    w = w.astype(jnp.bfloat16)
    tm = _pick_tile_m(K, N, residual is not None)
    if M < tm:
        tm = _round_up(M, 8)
    M_pad = _round_up(M, tm)
    if M_pad != M:
        x = jnp.pad(x, ((0, M_pad - M), (0, 0)))

    in_specs = [pl.BlockSpec((tm, K), lambda i: (i, 0)),
                pl.BlockSpec((K, N), lambda i: (0, 0)),
                pl.BlockSpec((1, N), lambda i: (0, 0))]
    args = [x, w, b]
    if residual is not None:
        r = residual.astype(jnp.bfloat16)
        if M_pad != M:
            r = jnp.pad(r, ((0, M_pad - M), (0, 0)))
        in_specs.append(pl.BlockSpec((tm, N), lambda i: (i, 0)))
        args.append(r)
        kernel = functools.partial(_mm_res_kernel, relu=relu)
    else:
        kernel = functools.partial(_mm_kernel, relu=relu)

    out = pl.pallas_call(
        kernel,
        out_shape=jax.ShapeDtypeStruct((M_pad, N), out_dtype),
        grid=(M_pad // tm,),
        in_specs=in_specs,
        out_specs=pl.BlockSpec((tm, N), lambda i: (i, 0)),
        compiler_params=_PARALLEL,
    )(*args)
    return out[:M]


def _fused_conv(x, w, b, residual, *, k, stride, pad, relu):
    """Fused direct conv (no im2col in HBM).  x: (N,H,W,Cin) bf16."""
    N, H, W, Cin = x.shape
    Cout = w.shape[-1]
    Ho = (H + 2 * pad - k) // stride + 1
    Wo = (W + 2 * pad - k) // stride + 1

    if Cin < 16:                       # conv1 (Cin=3): pad K up to a clean bf16 tile
        cpad = 16 - Cin
        x = jnp.pad(x, ((0, 0), (0, 0), (0, 0), (0, cpad)))
        w = jnp.pad(w, ((0, 0), (0, cpad), (0, 0)))

    xp = jnp.pad(x, ((0, 0), (pad, pad), (pad, pad), (0, 0)))
    if stride == 1:
        parts = (xp,)
    else:
        if xp.shape[2] % 2:
            xp = jnp.pad(xp, ((0, 0), (0, 0), (0, 1), (0, 0)))
        parts = (xp[:, :, 0::2, :], xp[:, :, 1::2, :])   # even / odd columns

    in_specs = [pl.BlockSpec((None,) + p.shape[1:], lambda n: (n, 0, 0, 0))
                for p in parts]
    args = list(parts) + [w, b]
    in_specs += [pl.BlockSpec(w.shape, lambda n: (0, 0, 0)),
                 pl.BlockSpec(b.shape, lambda n: (0, 0))]
    has_res = residual is not None
    if has_res:
        args.append(residual.astype(jnp.bfloat16))
        in_specs.append(pl.BlockSpec((None, Ho, Wo, Cout), lambda n: (n, 0, 0, 0)))

    kernel = functools.partial(_fused_conv_kernel, k=k, stride=stride, Ho=Ho,
                               Wo=Wo, relu=relu, has_res=has_res,
                               nparts=len(parts))
    return pl.pallas_call(
        kernel,
        out_shape=jax.ShapeDtypeStruct((N, Ho, Wo, Cout), jnp.bfloat16),
        grid=(N,),
        in_specs=in_specs,
        out_specs=pl.BlockSpec((None, Ho, Wo, Cout), lambda n: (n, 0, 0, 0)),
        compiler_params=_PARALLEL,
    )(*args)


def _extract_patches(x, k, stride, pad):
    """im2col (bf16): (N,H,W,C) -> ((N*Ho*Wo, k*k*C), Ho, Wo), (ky,kx,cin) order."""
    N, H, W, C = x.shape
    xp = jnp.pad(x, ((0, 0), (pad, pad), (pad, pad), (0, 0)))
    Ho = (H + 2 * pad - k) // stride + 1
    Wo = (W + 2 * pad - k) // stride + 1
    taps = []
    for ky in range(k):
        for kx in range(k):
            taps.append(
                xp[:, ky:ky + stride * (Ho - 1) + 1:stride,
                      kx:kx + stride * (Wo - 1) + 1:stride, :])
    p = jnp.stack(taps, axis=3)                    # (N, Ho, Wo, k*k, C)
    return p.reshape(N * Ho * Wo, k * k * C), Ho, Wo


@functools.partial(jax.jit, static_argnames=("k", "stride", "pad", "relu"))
def conv_bn_act(x, w, b, residual=None, *, k, stride, pad, relu):
    """Conv2d(bias=False) + folded eval-mode BatchNorm (+residual) (+ReLU).

    w: (k*k, Cin, Cout) bf16 with BN scale already folded in; b: (1, Cout) f32.
    """
    N, H, W, Cin = x.shape
    Cout = w.shape[-1]
    if k > 1 and Cin <= 128:
        # memory-bound layers: fused direct conv (no im2col through HBM)
        return _fused_conv(x, w, b, residual, k=k, stride=stride, pad=pad, relu=relu)
    # large-K (layer3/4) and 1x1 convs: im2col + big-tile MXU matmul
    patches, Ho, Wo = _extract_patches(x, k, stride, pad)
    res2d = None
    if residual is not None:
        res2d = residual.reshape(N * Ho * Wo, Cout)
    out = matmul_bias(patches, w.reshape(k * k * Cin, Cout), b,
                      residual=res2d, relu=relu)
    return out.reshape(N, Ho, Wo, Cout)


@jax.jit
def maxpool_3x3_s2(x):
    """nn.MaxPool2d(kernel_size=3, stride=2, padding=1) on NHWC, fused."""
    N, H, W, C = x.shape
    Ho = (H + 2 - 3) // 2 + 1
    Wo = (W + 2 - 3) // 2 + 1
    neg = float(jnp.finfo(jnp.bfloat16).min)
    xp = jnp.pad(x, ((0, 0), (1, 1), (1, 1), (0, 0)), constant_values=neg)
    if xp.shape[2] % 2:
        xp = jnp.pad(xp, ((0, 0), (0, 0), (0, 1), (0, 0)), constant_values=neg)
    xe = xp[:, :, 0::2, :]
    xo = xp[:, :, 1::2, :]
    kernel = functools.partial(_maxpool_kernel, Ho=Ho, Wo=Wo)
    return pl.pallas_call(
        kernel,
        out_shape=jax.ShapeDtypeStruct((N, Ho, Wo, C), x.dtype),
        grid=(N,),
        in_specs=[pl.BlockSpec((None,) + xe.shape[1:], lambda n: (n, 0, 0, 0)),
                  pl.BlockSpec((None,) + xo.shape[1:], lambda n: (n, 0, 0, 0))],
        out_specs=pl.BlockSpec((None, Ho, Wo, C), lambda n: (n, 0, 0, 0)),
        compiler_params=_PARALLEL,
    )(xe, xo)


@jax.jit
def global_avgpool(x):
    """nn.AdaptiveAvgPool2d((1,1)) + flatten on NHWC -> (N, C) f32."""
    N, H, W, C = x.shape
    xr = x.reshape(N, H * W, C)
    out = pl.pallas_call(
        _avgpool_kernel,
        out_shape=jax.ShapeDtypeStruct((N, 1, C), jnp.float32),
        grid=(N,),
        in_specs=[pl.BlockSpec((1, H * W, C), lambda i: (i, 0, 0))],
        out_specs=pl.BlockSpec((1, 1, C), lambda i: (i, 0, 0)),
        compiler_params=_PARALLEL,
    )(xr)
    return out.reshape(N, C)


# ----------------------------------------------------------------------------
# AOLM (simplified) + bilinear crop-resize (tiny glue, plain jnp)
# ----------------------------------------------------------------------------
def aolm_coordinates(x_last, x_last2, in_h, in_w):
    """Activation-based bounding boxes in input-pixel coords [x0, y0, x1, y1]."""
    B, Hf, Wf, _ = x_last.shape
    # channel sums are tiny (N*Hf*Wf elements) -> plain jnp reduction
    a = jnp.sum(x_last.astype(jnp.float32), axis=-1)
    a2 = jnp.sum(x_last2.astype(jnp.float32), axis=-1)
    m1 = a > jnp.mean(a, axis=(1, 2), keepdims=True)
    m2 = a2 > jnp.mean(a2, axis=(1, 2), keepdims=True)
    # TODO(synk): original AOLM picks the largest skimage connected component;
    # no JAX equivalent — we use the bbox of the thresholded-mask intersection.
    mask = jnp.logical_and(m1, m2)

    def per_image(m):
        any_r = jnp.any(m, axis=1)
        any_c = jnp.any(m, axis=0)
        has = jnp.any(any_r)
        r0 = jnp.argmax(any_r)
        r1 = Hf - 1 - jnp.argmax(any_r[::-1])
        c0 = jnp.argmax(any_c)
        c1 = Wf - 1 - jnp.argmax(any_c[::-1])
        r0 = jnp.where(has, r0, 0)
        r1 = jnp.where(has, r1, Hf - 1)
        c0 = jnp.where(has, c0, 0)
        c1 = jnp.where(has, c1, Wf - 1)
        return jnp.stack([r0, c0, r1, c1])

    boxes = jax.vmap(per_image)(mask)
    sh, sw = in_h // Hf, in_w // Wf
    x0 = boxes[:, 0] * sh
    y0 = boxes[:, 1] * sw
    x1 = jnp.minimum((boxes[:, 2] + 1) * sh - 1, in_h - 1)
    y1 = jnp.minimum((boxes[:, 3] + 1) * sw - 1, in_w - 1)
    return jnp.stack([x0, y0, x1, y1], axis=1).astype(jnp.int32)


def _crop_resize_one(img, box, size):
    """F.interpolate(x[:, :, x0:x1+1, y0:y1+1], (size,size), bilinear, align_corners=True)."""
    x0, y0, x1, y1 = box[0], box[1], box[2], box[3]
    r = jnp.arange(size, dtype=jnp.float32)
    hs = x0.astype(jnp.float32) + r * (x1 - x0).astype(jnp.float32) / (size - 1)
    ws = y0.astype(jnp.float32) + r * (y1 - y0).astype(jnp.float32) / (size - 1)
    h0 = jnp.floor(hs).astype(jnp.int32)
    w0 = jnp.floor(ws).astype(jnp.int32)
    h1 = jnp.minimum(h0 + 1, x1)
    w1 = jnp.minimum(w0 + 1, y1)
    fh = (hs - h0.astype(jnp.float32))[:, None, None]
    fw = (ws - w0.astype(jnp.float32))[None, :, None]
    top = jnp.take(img, h0, axis=0)
    bot = jnp.take(img, h1, axis=0)
    tl = jnp.take(top, w0, axis=1)
    tr = jnp.take(top, w1, axis=1)
    bl = jnp.take(bot, w0, axis=1)
    br = jnp.take(bot, w1, axis=1)
    return (tl * (1 - fh) * (1 - fw) + tr * (1 - fh) * fw
            + bl * fh * (1 - fw) + br * fh * fw)


crop_resize = jax.jit(jax.vmap(_crop_resize_one, in_axes=(0, 0, None)),
                      static_argnums=2)


# ----------------------------------------------------------------------------
# Parameter init (deterministic, mirrors PyTorch defaults; BN scale folded)
# ----------------------------------------------------------------------------
def _conv_bn_init(key, k, cin, cout):
    # nn.init.kaiming_normal_(mode='fan_out', nonlinearity='relu') + eval-mode
    # BatchNorm2d defaults (gamma=1, beta=0, mean=0, var=1) folded in.
    # NOTE: weights are stored as (ky*kx, cin, cout); loading real PyTorch OIHW
    # weights would require the matching transpose.
    std = (2.0 / (k * k * cout)) ** 0.5
    w = std * jax.random.normal(key, (k * k, cin, cout), jnp.float32)
    scale = 1.0 / (1.0 + _BN_EPS) ** 0.5
    w = (w * scale).astype(jnp.bfloat16)
    b = jnp.zeros((1, cout), jnp.float32)
    return w, b


def _linear_init(key, cin, cout):
    k1, k2 = jax.random.split(key)
    bound = 1.0 / (cin ** 0.5)
    w = jax.random.uniform(k1, (cin, cout), jnp.float32, -bound, bound).astype(jnp.bfloat16)
    b = jax.random.uniform(k2, (1, cout), jnp.float32, -bound, bound)
    return w, b


def init_basic_block(key, cin, cout, stride):
    ks = jax.random.split(key, 3)
    w1, b1 = _conv_bn_init(ks[0], 3, cin, cout)
    w2, b2 = _conv_bn_init(ks[1], 3, cout, cout)
    p = {"w1": w1, "b1": b1, "w2": w2, "b2": b2}
    has_ds = (stride != 1) or (cin != cout)
    if has_ds:
        wd, bd = _conv_bn_init(ks[2], 1, cin, cout)
        p["wd"], p["bd"] = wd, bd
    return p, {"stride": stride, "has_ds": has_ds}


def init_resnet(key, blocks_num, num_classes):
    keys = jax.random.split(key, 6)
    w1, b1 = _conv_bn_init(keys[0], 7, 3, 64)
    params = {"conv1": w1, "b1": b1}
    cfg = {}
    in_ch = 64
    layer_defs = [(64, blocks_num[0], 1), (128, blocks_num[1], 2),
                  (256, blocks_num[2], 2), (512, blocks_num[3], 2)]
    for li, (ch, n, stride) in enumerate(layer_defs):
        bkeys = jax.random.split(keys[1 + li], n)
        blocks, bcfgs = [], []
        for bi in range(n):
            s = stride if bi == 0 else 1
            bp, bc = init_basic_block(bkeys[bi], in_ch, ch, s)
            in_ch = ch
            blocks.append(bp)
            bcfgs.append(bc)
        params[f"layer{li + 1}"] = blocks
        cfg[f"layer{li + 1}"] = bcfgs
    params["fc"] = _linear_init(keys[5], 512, num_classes)
    return params, cfg


# ----------------------------------------------------------------------------
# Forward passes
# ----------------------------------------------------------------------------
def basic_block_fwd(x, p, c):
    identity = x
    if c["has_ds"]:
        identity = conv_bn_act(x, p["wd"], p["bd"],
                               k=1, stride=c["stride"], pad=0, relu=False)
    out = conv_bn_act(x, p["w1"], p["b1"],
                      k=3, stride=c["stride"], pad=1, relu=True)
    out = conv_bn_act(out, p["w2"], p["b2"], identity,
                      k=3, stride=1, pad=1, relu=True)
    return out


def resnet_fwd(x, P, C):
    x = x.astype(jnp.bfloat16)
    x = conv_bn_act(x, P["conv1"], P["b1"], k=7, stride=2, pad=3, relu=True)
    x = maxpool_3x3_s2(x)
    for li in (1, 2, 3):
        for bp, bc in zip(P[f"layer{li}"], C[f"layer{li}"]):
            x = basic_block_fwd(x, bp, bc)
    # mirrors the original forward's quirk: layer4[0:1] then layer4[2] (skips [1])
    x_last2 = basic_block_fwd(x, P["layer4"][0], C["layer4"][0])
    x_last = basic_block_fwd(x_last2, P["layer4"][2], C["layer4"][2])
    pooled = global_avgpool(x_last)                       # (N, 512) f32
    w, b = P["fc"]
    logits = matmul_bias(pooled.astype(jnp.bfloat16), w, b, out_dtype=jnp.float32)
    return x_last2, x_last, logits


def res50_aolm_fwd(x_nhwc, P1, C1, P2, C2, local_size):
    x_last2, x_last, x_lin1 = resnet_fwd(x_nhwc, P1, C1)
    coords = aolm_coordinates(x_last, x_last2, x_nhwc.shape[1], x_nhwc.shape[2])
    # TODO(synk): the original module hardcodes 480x480 local crops; local_size
    # is parameterized so the synthetic test stays small.
    local_imgs = crop_resize(x_nhwc, coords, local_size)
    _, x_last_b, x_lin2 = resnet_fwd(local_imgs, P2, C2)
    return x_lin1, x_lin2, x_last_b


class ALOMResNetTwoPart:
    """Functional JAX/Pallas port of ALOM_ResNet_two_part (shared ResNet50_AOLM)."""

    def __init__(self, key, blocks_num, num_classes, local_size=480):
        k1, k2, k3 = jax.random.split(key, 3)
        self.P1, self.C1 = init_resnet(k1, blocks_num, num_classes)   # AOLM.res1
        self.P2, self.C2 = init_resnet(k2, blocks_num, num_classes)   # AOLM.res2
        self.fc = _linear_init(k3, 512 * 2, num_classes)
        self.local_size = local_size

    def __call__(self, x1, x2):
        # inputs: NCHW (PyTorch convention) -> NHWC internally.
        # The PyTorch module runs self.res1(x1) and self.res1(x2) with the SAME
        # weights, so we batch both inputs through one pass: half the kernel
        # launches, 2x matmul M, better megacore utilization.
        B = x1.shape[0]
        x = jnp.concatenate([x1, x2], axis=0)                      # (2B, 3, H, W)
        xh = jnp.transpose(x, (0, 2, 3, 1)).astype(jnp.float32)    # (2B, H, W, 3)
        lin, _, last = res50_aolm_fwd(xh, self.P1, self.C1,
                                      self.P2, self.C2, self.local_size)
        feat = global_avgpool(last)                                # (2B, 512) f32
        cat = jnp.concatenate([feat[:B], feat[B:]], axis=1)        # (B, 1024)
        w, b = self.fc
        logits = matmul_bias(cat.astype(jnp.bfloat16), w, b, out_dtype=jnp.float32)
        return lin[:B], lin[B:], logits


# ----------------------------------------------------------------------------
if __name__ == "__main__":
    key = jax.random.PRNGKey(0)
    kparams, kdata = jax.random.split(key)

    NUM_CLASSES = 10
    BLOCKS_NUM = [1, 1, 1, 3]   # blocks_num[3] >= 3 required (layer4[2] is used)
    B, H, W = 2, 64, 64
    LOCAL_SIZE = 64             # original module uses 480; kept small here

    model = ALOMResNetTwoPart(kparams, BLOCKS_NUM, NUM_CLASSES, LOCAL_SIZE)

    kx1, kx2 = jax.random.split(kdata)
    x1 = jax.random.normal(kx1, (B, 3, H, W), jnp.float32)
    x2 = jax.random.normal(kx2, (B, 3, H, W), jnp.float32)

    y1, y2, logits = model(x1, x2)
    jax.block_until_ready((y1, y2, logits))

    assert y1.shape == (B, NUM_CLASSES)
    assert y2.shape == (B, NUM_CLASSES)
    assert logits.shape == (B, NUM_CLASSES)
    assert all(bool(jnp.all(jnp.isfinite(t))) for t in (y1, y2, logits))
    print("KERNEL_OK")
</pallas_src>

<mosaic_0001>
module attributes {stable_mosaic.version = 11 : i64} {
  func.func @_fused_conv_kernel(%arg0: i32, %arg1: memref<1x70x35x16xbf16, #tpu.memory_space<vmem>>, %arg2: memref<1x70x35x16xbf16, #tpu.memory_space<vmem>>, %arg3: memref<49x16x64xbf16, #tpu.memory_space<vmem>>, %arg4: memref<1x64xf32, #tpu.memory_space<vmem>>, %arg5: memref<1x32x32x64xbf16, #tpu.memory_space<vmem>>) attributes {dimension_semantics = [#tpu.dimension_semantics<parallel>], iteration_bounds = array<i64: 4>, scalar_prefetch = 0 : i64, scratch_operands = 0 : i64, tpu.core_type = #tpu.core_type<tc>, window_params = [{transform_indices = @transform_0, window_bounds = array<i64: 1, 70, 35, 16>}, {transform_indices = @transform_1, window_bounds = array<i64: 1, 70, 35, 16>}, {pipeline_mode = #tpu.pipeline_mode<synchronous>, transform_indices = @transform_2, window_bounds = array<i64: 49, 16, 64>}, {pipeline_mode = #tpu.pipeline_mode<synchronous>, transform_indices = @transform_3, window_bounds = array<i64: 1, 64>}, {transform_indices = @transform_4, window_bounds = array<i64: 1, 32, 32, 64>}]} {
    %c0 = arith.constant 0 : index
    %c0_0 = arith.constant 0 : index
    %0 = vector.load %arg4[%c0, %c0_0] : memref<1x64xf32, #tpu.memory_space<vmem>>, vector<1x64xf32>
    %c0_i32 = arith.constant 0 : i32
    %c32_i32 = arith.constant 32 : i32
    %1 = arith.addi %c0_i32, %c32_i32 : i32
    %c1_i32 = arith.constant 1 : i32
    scf.for %arg6 = %c0_i32 to %1 step %c1_i32  : i32 {
      %cst = arith.constant 0.000000e+00 : f32
      %2 = vector.broadcast %cst : f32 to vector<32x64xf32>
      %c2_i32 = arith.constant 2 : i32
      %3 = arith.muli %arg6, %c2_i32 : i32
      %c0_i32_2 = arith.constant 0 : i32
      %4 = arith.addi %3, %c0_i32_2 : i32
      %c0_3 = arith.constant 0 : index
      %5 = arith.index_cast %4 : i32 to index
      %c0_4 = arith.constant 0 : index
      %c0_5 = arith.constant 0 : index
      %6 = vector.load %arg1[%c0_3, %5, %c0_4, %c0_5] : memref<1x70x35x16xbf16, #tpu.memory_space<vmem>>, vector<1x1x32x16xbf16>
      %7 = vector.shape_cast %6 : vector<1x1x32x16xbf16> to vector<32x16xbf16>
      %c0_6 = arith.constant 0 : index
      %c0_7 = arith.constant 0 : index
      %c0_8 = arith.constant 0 : index
      %8 = vector.load %arg3[%c0_6, %c0_7, %c0_8] : memref<49x16x64xbf16, #tpu.memory_space<vmem>>, vector<1x16x64xbf16>
      %9 = vector.shape_cast %8 : vector<1x16x64xbf16> to vector<16x64xbf16>
      %cst_9 = arith.constant dense<0.000000e+00> : vector<32x64xf32>
      %10 = tpu.matmul %7, %9, %cst_9 {dimension_numbers = #tpu.dot_dimension_numbers<[1], [0], [0], [1], [0, 0, 1, 1], [], []>} : vector<32x16xbf16>, vector<16x64xbf16>, vector<32x64xf32> -> vector<32x64xf32>
      %11 = arith.addf %2, %10 : vector<32x64xf32>
      %c0_10 = arith.constant 0 : index
      %12 = arith.index_cast %4 : i32 to index
      %c0_11 = arith.constant 0 : index
      %c0_12 = arith.constant 0 : index
      %13 = vector.load %arg2[%c0_10, %12, %c0_11, %c0_12] : memref<1x70x35x16xbf16, #tpu.memory_space<vmem>>, vector<1x1x32x16xbf16>
      %14 = vector.shape_cast %13 : vector<1x1x32x16xbf16> to vector<32x16xbf16>
      %c1 = arith.constant 1 : index
      %c0_13 = arith.constant 0 : index
      %c0_14 = arith.constant 0 : index
      %15 = vector.load %arg3[%c1, %c0_13, %c0_14] : memref<49x16x64xbf16, #tpu.memory_space<vmem>>, vector<1x16x64xbf16>
      %16 = vector.shape_cast %15 : vector<1x16x64xbf16> to vector<16x64xbf16>
      %cst_15 = arith.constant dense<0.000000e+00> : vector<32x64xf32>
      %17 = tpu.matmul %14, %16, %cst_15 {dimension_numbers = #tpu.dot_dimension_numbers<[1], [0], [0], [1], [0, 0, 1, 1], [], []>} : vector<32x16xbf16>, vector<16x64xbf16>, vector<32x64xf32> -> vector<32x64xf32>
      %18 = arith.addf %11, %17 : vector<32x64xf32>
      %c0_16 = arith.constant 0 : index
      %19 = arith.index_cast %4 : i32 to index
      %c1_17 = arith.constant 1 : index
      %c0_18 = arith.constant 0 : index
      %20 = vector.load %arg1[%c0_16, %19, %c1_17, %c0_18] : memref<1x70x35x16xbf16, #tpu.memory_space<vmem>>, vector<1x1x32x16xbf16>
      %21 = vector.shape_cast %20 : vector<1x1x32x16xbf16> to vector<32x16xbf16>
      %c2 = arith.constant 2 : index
      %c0_19 = arith.constant 0 : index
      %c0_20 = arith.constant 0 : index
      %22 = vector.load %arg3[%c2, %c0_19, %c0_20] : memref<49x16x64xbf16, #tpu.memory_space<vmem>>, vector<1x16x64xbf16>
      %23 = vector.shape_cast %22 : vector<1x16x64xbf16> to vector<16x64xbf16>
      %cst_21 = arith.constant dense<0.000000e+00> : vector<32x64xf32>
      %24 = tpu.matmul %21, %23, %cst_21 {dimension_numbers = #tpu.dot_dimension_numbers<[1], [0], [0], [1], [0, 0, 1, 1], [], []>} : vector<32x16xbf16>, vector<16x64xbf16>, vector<32x64xf32> -> vector<32x64xf32>
      %25 = arith.addf %18, %24 : vector<32x64xf32>
      %c0_22 = arith.constant 0 : index
      %26 = arith.index_cast %4 : i32 to index
      %c1_23 = arith.constant 1 : index
      %c0_24 = arith.constant 0 : index
      %27 = vector.load %arg2[%c0_22, %26, %c1_23, %c0_24] : memref<1x70x35x16xbf16, #tpu.memory_space<vmem>>, vector<1x1x32x16xbf16>
      %28 = vector.shape_cast %27 : vector<1x1x32x16xbf16> to vector<32x16xbf16>
      %c3 = arith.constant 3 : index
      %c0_25 = arith.constant 0 : index
      %c0_26 = arith.constant 0 : index
      %29 = vector.load %arg3[%c3, %c0_25, %c0_26] : memref<49x16x64xbf16, #tpu.memory_space<vmem>>, vector<1x16x64xbf16>
      %30 = vector.shape_cast %29 : vector<1x16x64xbf16> to vector<16x64xbf16>
      %cst_27 = arith.constant dense<0.000000e+00> : vector<32x64xf32>
      %31 = tpu.matmul %28, %30, %cst_27 {dimension_numbers = #tpu.dot_dimension_numbers<[1], [0], [0], [1], [0, 0, 1, 1], [], []>} : vector<32x16xbf16>, vector<16x64xbf16>, vector<32x64xf32> -> vector<32x64xf32>
      %32 = arith.addf %25, %31 : vector<32x64xf32>
      %c0_28 = arith.constant 0 : index
      %33 = arith.index_cast %4 : i32 to index
      %c2_29 = arith.constant 2 : index
      %c0_30 = arith.constant 0 : index
      %34 = vector.load %arg1[%c0_28, %33, %c2_29, %c0_30] : memref<1x70x35x16xbf16, #tpu.memory_space<vmem>>, vector<1x1x32x16xbf16>
      %35 = vector.shape_cast %34 : vector<1x1x32x16xbf16> to vector<32x16xbf16>
      %c4 = arith.constant 4 : index
      %c0_31 = arith.constant 0 : index
      %c0_32 = arith.constant 0 : index
      %36 = vector.load %arg3[%c4, %c0_31, %c0_32] : memref<49x16x64xbf16, #tpu.memory_space<vmem>>, vector<1x16x64xbf16>
      %37 = vector.shape_cast %36 : vector<1x16x64xbf16> to vector<16x64xbf16>
      %cst_33 = arith.constant dense<0.000000e+00> : vector<32x64xf32>
      %38 = tpu.matmul %35, %37, %cst_33 {dimension_numbers = #tpu.dot_dimension_numbers<[1], [0], [0], [1], [0, 0, 1, 1], [], []>} : vector<32x16xbf16>, vector<16x64xbf16>, vector<32x64xf32> -> vector<32x64xf32>
      %39 = arith.addf %32, %38 : vector<32x64xf32>
      %c0_34 = arith.constant 0 : index
      %40 = arith.index_cast %4 : i32 to index
      %c2_35 = arith.constant 2 : index
      %c0_36 = arith.constant 0 : index
      %41 = vector.load %arg2[%c0_34, %40, %c2_35, %c0_36] : memref<1x70x35x16xbf16, #tpu.memory_space<vmem>>, vector<1x1x32x16xbf16>
      %42 = vector.shape_cast %41 : vector<1x1x32x16xbf16> to vector<32x16xbf16>
      %c5 = arith.constant 5 : index
      %c0_37 = arith.constant 0 : index
      %c0_38 = arith.constant 0 : index
      %43 = vector.load %arg3[%c5, %c0_37, %c0_38] : memref<49x16x64xbf16, #tpu.memory_space<vmem>>, vector<1x16x64xbf16>
      %44 = vector.shape_cast %43 : vector<1x16x64xbf16> to vector<16x64xbf16>
      %cst_39 = arith.constant dense<0.000000e+00> : vector<32x64xf32>
      %45 = tpu.matmul %42, %44, %cst_39 {dimension_numbers = #tpu.dot_dimension_numbers<[1], [0], [0], [1], [0, 0, 1, 1], [], []>} : vector<32x16xbf16>, vector<16x64xbf16>, vector<32x64xf32> -> vector<32x64xf32>
      %46 = arith.addf %39, %45 : vector<32x64xf32>
      %c0_40 = arith.constant 0 : index
      %47 = arith.index_cast %4 : i32 to index
      %c3_41 = arith.constant 3 : index
      %c0_42 = arith.constant 0 : index
      %48 = vector.load %arg1[%c0_40, %47, %c3_41, %c0_42] : memref<1x70x35x16xbf16, #tpu.memory_space<vmem>>, vector<1x1x32x16xbf16>
      %49 = vector.shape_cast %48 : vector<1x1x32x16xbf16> to vector<32x16xbf16>
      %c6 = arith.constant 6 : index
      %c0_43 = arith.constant 0 : index
      %c0_44 = arith.constant 0 : index
      %50 = vector.load %arg3[%c6, %c0_43, %c0_44] : memref<49x16x64xbf16, #tpu.memory_space<vmem>>, vector<1x16x64xbf16>
      %51 = vector.shape_cast %50 : vector<1x16x64xbf16> to vector<16x64xbf16>
      %cst_45 = arith.constant dense<0.000000e+00> : vector<32x64xf32>
      %52 = tpu.matmul %49, %51, %cst_45 {dimension_numbers = #tpu.dot_dimension_numbers<[1], [0], [0], [1], [0, 0, 1, 1], [], []>} : vector<32x16xbf16>, vector<16x64xbf16>, vector<32x64xf32> -> vector<32x64xf32>
      %53 = arith.addf %46, %52 : vector<32x64xf32>
      %c2_i32_46 = arith.constant 2 : i32
      %54 = arith.muli %arg6, %c2_i32_46 : i32
      %c1_i32_47 = arith.constant 1 : i32
      %55 = arith.addi %54, %c1_i32_47 : i32
      %c0_48 = arith.constant 0 : index
      %56 = arith.index_cast %55 : i32 to index
      %c0_49 = arith.constant 0 : index
      %c0_50 = arith.constant 0 : index
      %57 = vector.load %arg1[%c0_48, %56, %c0_49, %c0_50] : memref<1x70x35x16xbf16, #tpu.memory_space<vmem>>, vector<1x1x32x16xbf16>
      %58 = vector.shape_cast %57 : vector<1x1x32x16xbf16> to vector<32x16xbf16>
      %c7 = arith.constant 7 : index
      %c0_51 = arith.constant 0 : index
      %c0_52 = arith.constant 0 : index
      %59 = vector.load %arg3[%c7, %c0_51, %c0_52] : memref<49x16x64xbf16, #tpu.memory_space<vmem>>, vector<1x16x64xbf16>
      %60 = vector.shape_cast %59 : vector<1x16x64xbf16> to vector<16x64xbf16>
      %cst_53 = arith.constant dense<0.000000e+00> : vector<32x64xf32>
      %61 = tpu.matmul %58, %60, %cst_53 {dimension_numbers = #tpu.dot_dimension_numbers<[1], [0], [0], [1], [0, 0, 1, 1], [], []>} : vector<32x16xbf16>, vector<16x64xbf16>, vector<32x64xf32> -> vector<32x64xf32>
      %62 = arith.addf %53, %61 : vector<32x64xf32>
      %c0_54 = arith.constant 0 : index
      %63 = arith.index_cast %55 : i32 to index
      %c0_55 = arith.constant 0 : index
      %c0_56 = arith.constant 0 : index
      %64 = vector.load %arg2[%c0_54, %63, %c0_55, %c0_56] : memref<1x70x35x16xbf16, #tpu.memory_space<vmem>>, vector<1x1x32x16xbf16>
      %65 = vector.shape_cast %64 : vector<1x1x32x16xbf16> to vector<32x16xbf16>
      %c8 = arith.constant 8 : index
      %c0_57 = arith.constant 0 : index
      %c0_58 = arith.constant 0 : index
      %66 = vector.load %arg3[%c8, %c0_57, %c0_58] : memref<49x16x64xbf16, #tpu.memory_space<vmem>>, vector<1x16x64xbf16>
      %67 = vector.shape_cast %66 : vector<1x16x64xbf16> to vector<16x64xbf16>
      %cst_59 = arith.constant dense<0.000000e+00> : vector<32x64xf32>
      %68 = tpu.matmul %65, %67, %cst_59 {dimension_numbers = #tpu.dot_dimension_numbers<[1], [0], [0], [1], [0, 0, 1, 1], [], []>} : vector<32x16xbf16>, vector<16x64xbf16>, vector<32x64xf32> -> vector<32x64xf32>
      %69 = arith.addf %62, %68 : vector<32x64xf32>
      %c0_60 = arith.constant 0 : index
      %70 = arith.index_cast %55 : i32 to index
      %c1_61 = arith.constant 1 : index
      %c0_62 = arith.constant 0 : index
      %71 = vector.load %arg1[%c0_60, %70, %c1_61, %c0_62] : memref<1x70x35x16xbf16, #tpu.memory_space<vmem>>, vector<1x1x32x16xbf16>
      %72 = vector.shape_cast %71 : vector<1x1x32x16xbf16> to vector<32x16xbf16>
      %c9 = arith.constant 9 : index
      %c0_63 = arith.constant 0 : index
      %c0_64 = arith.constant 0 : index
      %73 = vector.load %arg3[%c9, %c0_63, %c0_64] : memref<49x16x64xbf16, #tpu.memory_space<vmem>>, vector<1x16x64xbf16>
      %74 = vector.shape_cast %73 : vector<1x16x64xbf16> to vector<16x64xbf16>
      %cst_65 = arith.constant dense<0.000000e+00> : vector<32x64xf32>
      %75 = tpu.matmul %72, %74, %cst_65 {dimension_numbers = #tpu.dot_dimension_numbers<[1], [0], [0], [1], [0, 0, 1, 1], [], []>} : vector<32x16xbf16>, vector<16x64xbf16>, vector<32x64xf32> -> vector<32x64xf32>
      %76 = arith.addf %69, %75 : vector<32x64xf32>
      %c0_66 = arith.constant 0 : index
      %77 = arith.index_cast %55 : i32 to index
      %c1_67 = arith.constant 1 : index
      %c0_68 = arith.constant 0 : index
      %78 = vector.load %arg2[%c0_66, %77, %c1_67, %c0_68] : memref<1x70x35x16xbf16, #tpu.memory_space<vmem>>, vector<1x1x32x16xbf16>
      %79 = vector.shape_cast %78 : vector<1x1x32x16xbf16> to vector<32x16xbf16>
      %c10 = arith.constant 10 : index
      %c0_69 = arith.constant 0 : index
      %c0_70 = arith.constant 0 : index
      %80 = vector.load %arg3[%c10, %c0_69, %c0_70] : memref<49x16x64xbf16, #tpu.memory_space<vmem>>, vector<1x16x64xbf16>
      %81 = vector.shape_cast %80 : vector<1x16x64xbf16> to vector<16x64xbf16>
      %cst_71 = arith.constant dense<0.000000e+00> : vector<32x64xf32>
      %82 = tpu.matmul %79, %81, %cst_71 {dimension_numbers = #tpu.dot_dimension_numbers<[1], [0], [0], [1], [0, 0, 1, 1], [], []>} : vector<32x16xbf16>, vector<16x64xbf16>, vector<32x64xf32> -> vector<32x64xf32>
      %83 = arith.addf %76, %82 : vector<32x64xf32>
      %c0_72 = arith.constant 0 : index
      %84 = arith.index_cast %55 : i32 to index
      %c2_73 = arith.constant 2 : index
      %c0_74 = arith.constant 0 : index
      %85 = vector.load %arg1[%c0_72, %84, %c2_73, %c0_74] : memref<1x70x35x16xbf16, #tpu.memory_space<vmem>>, vector<1x1x32x16xbf16>
      %86 = vector.shape_cast %85 : vector<1x1x32x16xbf16> to vector<32x16xbf16>
      %c11 = arith.constant 11 : index
      %c0_75 = arith.constant 0 : index
      %c0_76 = arith.constant 0 : index
      %87 = vector.load %arg3[%c11, %c0_75, %c0_76] : memref<49x16x64xbf16, #tpu.memory_space<vmem>>, vector<1x16x64xbf16>
      %88 = vector.shape_cast %87 : vector<1x16x64xbf16> to vector<16x64xbf16>
      %cst_77 = arith.constant dense<0.000000e+00> : vector<32x64xf32>
      %89 = tpu.matmul %86, %88, %cst_77 {dimension_numbers = #tpu.dot_dimension_numbers<[1], [0], [0], [1], [0, 0, 1, 1], [], []>} : vector<32x16xbf16>, vector<16x64xbf16>, vector<32x64xf32> -> vector<32x64xf32>
      %90 = arith.addf %83, %89 : vector<32x64xf32>
      %c0_78 = arith.constant 0 : index
      %91 = arith.index_cast %55 : i32 to index
      %c2_79 = arith.constant 2 : index
      %c0_80 = arith.constant 0 : index
      %92 = vector.load %arg2[%c0_78, %91, %c2_79, %c0_80] : memref<1x70x35x16xbf16, #tpu.memory_space<vmem>>, vector<1x1x32x16xbf16>
      %93 = vector.shape_cast %92 : vector<1x1x32x16xbf16> to vector<32x16xbf16>
      %c12 = arith.constant 12 : index
      %c0_81 = arith.constant 0 : index
      %c0_82 = arith.constant 0 : index
      %94 = vector.load %arg3[%c12, %c0_81, %c0_82] : memref<49x16x64xbf16, #tpu.memory_space<vmem>>, vector<1x16x64xbf16>
      %95 = vector.shape_cast %94 : vector<1x16x64xbf16> to vector<16x64xbf16>
      %cst_83 = arith.constant dense<0.000000e+00> : vector<32x64xf32>
      %96 = tpu.matmul %93, %95, %cst_83 {dimension_numbers = #tpu.dot_dimension_numbers<[1], [0], [0], [1], [0, 0, 1, 1], [], []>} : vector<32x16xbf16>, vector<16x64xbf16>, vector<32x64xf32> -> vector<32x64xf32>
      %97 = arith.addf %90, %96 : vector<32x64xf32>
      %c0_84 = arith.constant 0 : index
      %98 = arith.index_cast %55 : i32 to index
      %c3_85 = arith.constant 3 : index
      %c0_86 = arith.constant 0 : index
      %99 = vector.load %arg1[%c0_84, %98, %c3_85, %c0_86] : memref<1x70x35x16xbf16, #tpu.memory_space<vmem>>, vector<1x1x32x16xbf16>
      %100 = vector.shape_cast %99 : vector<1x1x32x16xbf16> to vector<32x16xbf16>
      %c13 = arith.constant 13 : index
      %c0_87 = arith.constant 0 : index
      %c0_88 = arith.constant 0 : index
      %101 = vector.load %arg3[%c13, %c0_87, %c0_88] : memref<49x16x64xbf16, #tpu.memory_space<vmem>>, vector<1x16x64xbf16>
      %102 = vector.shape_cast %101 : vector<1x16x64xbf16> to vector<16x64xbf16>
      %cst_89 = arith.constant dense<0.000000e+00> : vector<32x64xf32>
      %103 = tpu.matmul %100, %102, %cst_89 {dimension_numbers = #tpu.dot_dimension_numbers<[1], [0], [0], [1], [0, 0, 1, 1], [], []>} : vector<32x16xbf16>, vector<16x64xbf16>, vector<32x64xf32> -> vector<32x64xf32>
      %104 = arith.addf %97, %103 : vector<32x64xf32>
      %c2_i32_90 = arith.constant 2 : i32
      %105 = arith.muli %arg6, %c2_i32_90 : i32
      %c2_i32_91 = arith.constant 2 : i32
      %106 = arith.addi %105, %c2_i32_91 : i32
      %c0_92 = arith.constant 0 : index
      %107 = arith.index_cast %106 : i32 to index
      %c0_93 = arith.constant 0 : index
      %c0_94 = arith.constant 0 : index
      %108 = vector.load %arg1[%c0_92, %107, %c0_93, %c0_94] : memref<1x70x35x16xbf16, #tpu.memory_space<vmem>>, vector<1x1x32x16xbf16>
      %109 = vector.shape_cast %108 : vector<1x1x32x16xbf16> to vector<32x16xbf16>
      %c14 = arith.constant 14 : index
      %c0_95 = arith.constant 0 : index
      %c0_96 = arith.constant 0 : index
      %110 = vector.load %arg3[%c14, %c0_95, %c0_96] : memref<49x16x64xbf16, #tpu.memory_space<vmem>>, vector<1x16x64xbf16>
      %111 = vector.shape_cast %110 : vector<1x16x64xbf16> to vector<16x64xbf16>
      %cst_97 = arith.constant dense<0.000000e+00> : vector<32x64xf32>
      %112 = tpu.matmul %109, %111, %cst_97 {dimension_numbers = #tpu.dot_dimension_numbers<[1], [0], [0], [1], [0, 0, 1, 1], [], []>} : vector<32x16xbf16>, vector<16x64xbf16>, vector<32x64xf32> -> vector<32x64xf32>
      %113 = arith.addf %104, %112 : vector<32x64xf32>
      %c0_98 = arith.constant 0 : index
      %114 = arith.index_cast %106 : i32 to index
      %c0_99 = arith.constant 0 : index
      %c0_100 = arith.constant 0 : index
      %115 = vector.load %arg2[%c0_98, %114, %c0_99, %c0_100] : memref<1x70x35x16xbf16, #tpu.memory_space<vmem>>, vector<1x1x32x16xbf16>
      %116 = vector.shape_cast %115 : vector<1x1x32x16xbf16> to vector<32x16xbf16>
      %c15 = arith.constant 15 : index
      %c0_101 = arith.constant 0 : index
      %c0_102 = arith.constant 0 : index
      %117 = vector.load %arg3[%c15, %c0_101, %c0_102] : memref<49x16x64xbf16, #tpu.memory_space<vmem>>, vector<1x16x64xbf16>
      %118 = vector.shape_cast %117 : vector<1x16x64xbf16> to vector<16x64xbf16>
      %cst_103 = arith.constant dense<0.000000e+00> : vector<32x64xf32>
      %119 = tpu.matmul %116, %118, %cst_103 {dimension_numbers = #tpu.dot_dimension_numbers<[1], [0], [0], [1], [0, 0, 1, 1], [], []>} : vector<32x16xbf16>, vector<16x64xbf16>, vector<32x64xf32> -> vector<32x64xf32>
      %120 = arith.addf %113, %119 : vector<32x64xf32>
      %c0_104 = arith.constant 0 : index
      %121 = arith.index_cast %106 : i32 to index
      %c1_105 = arith.constant 1 : index
      %c0_106 = arith.constant 0 : index
      %122 = vector.load %arg1[%c0_104, %121, %c1_105, %c0_106] : memref<1x70x35x16xbf16, #tpu.memory_space<vmem>>, vector<1x1x32x16xbf16>
      %123 = vector.shape_cast %122 : vector<1x1x32x16xbf16> to vector<32x16xbf16>
      %c16 = arith.constant 16 : index
      %c0_107 = arith.constant 0 : index
      %c0_108 = arith.constant 0 : index
      %124 = vector.load %arg3[%c16, %c0_107, %c0_108] : memref<49x16x64xbf16, #tpu.memory_space<vmem>>, vector<1x16x64xbf16>
      %125 = vector.shape_cast %124 : vector<1x16x64xbf16> to vector<16x64xbf16>
      %cst_109 = arith.constant dense<0.000000e+00> : vector<32x64xf32>
      %126 = tpu.matmul %123, %125, %cst_109 {dimension_numbers = #tpu.dot_dimension_numbers<[1], [0], [0], [1], [0, 0, 1, 1], [], []>} : vector<32x16xbf16>, vector<16x64xbf16>, vector<32x64xf32> -> vector<32x64xf32>
      %127 = arith.addf %120, %126 : vector<32x64xf32>
      %c0_110 = arith.constant 0 : index
      %128 = arith.index_cast %106 : i32 to index
      %c1_111 = arith.constant 1 : index
      %c0_112 = arith.constant 0 : index
      %129 = vector.load %arg2[%c0_110, %128, %c1_111, %c0_112] : memref<1x70x35x16xbf16, #tpu.memory_space<vmem>>, vector<1x1x32x16xbf16>
      %130 = vector.shape_cast %129 : vector<1x1x32x16xbf16> to vector<32x16xbf16>
      %c17 = arith.constant 17 : index
      %c0_113 = arith.constant 0 : index
      %c0_114 = arith.constant 0 : index
      %131 = vector.load %arg3[%c17, %c0_113, %c0_114] : memref<49x16x64xbf16, #tpu.memory_space<vmem>>, vector<1x16x64xbf16>
      %132 = vector.shape_cast %131 : vector<1x16x64xbf16> to vector<16x64xbf16>
      %cst_115 = arith.constant dense<0.000000e+00> : vector<32x64xf32>
      %133 = tpu.matmul %130, %132, %cst_115 {dimension_numbers = #tpu.dot_dimension_numbers<[1], [0], [0], [1], [0, 0, 1, 1], [], []>} : vector<32x16xbf16>, vector<16x64xbf16>, vector<32x64xf32> -> vector<32x64xf32>
      %134 = arith.addf %127, %133 : vector<32x64xf32>
      %c0_116 = arith.constant 0 : index
      %135 = arith.index_cast %106 : i32 to index
      %c2_117 = arith.constant 2 : index
      %c0_118 = arith.constant 0 : index
      %136 = vector.load %arg1[%c0_116, %135, %c2_117, %c0_118] : memref<1x70x35x16xbf16, #tpu.memory_space<vmem>>, vector<1x1x32x16xbf16>
      %137 = vector.shape_cast %136 : vector<1x1x32x16xbf16> to vector<32x16xbf16>
      %c18 = arith.constant 18 : index
      %c0_119 = arith.constant 0 : index
      %c0_120 = arith.constant 0 : index
      %138 = vector.load %arg3[%c18, %c0_119, %c0_120] : memref<49x16x64xbf16, #tpu.memory_space<vmem>>, vector<1x16x64xbf16>
      %139 = vector.shape_cast %138 : vector<1x16x64xbf16> to vector<16x64xbf16>
      %cst_121 = arith.constant dense<0.000000e+00> : vector<32x64xf32>
      %140 = tpu.matmul %137, %139, %cst_121 {dimension_numbers = #tpu.dot_dimension_numbers<[1], [0], [0], [1], [0, 0, 1, 1], [], []>} : vector<32x16xbf16>, vector<16x64xbf16>, vector<32x64xf32> -> vector<32x64xf32>
      %141 = arith.addf %134, %140 : vector<32x64xf32>
      %c0_122 = arith.constant 0 : index
      %142 = arith.index_cast %106 : i32 to index
      %c2_123 = arith.constant 2 : index
      %c0_124 = arith.constant 0 : index
      %143 = vector.load %arg2[%c0_122, %142, %c2_123, %c0_124] : memref<1x70x35x16xbf16, #tpu.memory_space<vmem>>, vector<1x1x32x16xbf16>
      %144 = vector.shape_cast %143 : vector<1x1x32x16xbf16> to vector<32x16xbf16>
      %c19 = arith.constant 19 : index
      %c0_125 = arith.constant 0 : index
      %c0_126 = arith.constant 0 : index
      %145 = vector.load %arg3[%c19, %c0_125, %c0_126] : memref<49x16x64xbf16, #tpu.memory_space<vmem>>, vector<1x16x64xbf16>
      %146 = vector.shape_cast %145 : vector<1x16x64xbf16> to vector<16x64xbf16>
      %cst_127 = arith.constant dense<0.000000e+00> : vector<32x64xf32>
      %147 = tpu.matmul %144, %146, %cst_127 {dimension_numbers = #tpu.dot_dimension_numbers<[1], [0], [0], [1], [0, 0, 1, 1], [], []>} : vector<32x16xbf16>, vector<16x64xbf16>, vector<32x64xf32> -> vector<32x64xf32>
      %148 = arith.addf %141, %147 : vector<32x64xf32>
      %c0_128 = arith.constant 0 : index
      %149 = arith.index_cast %106 : i32 to index
      %c3_129 = arith.constant 3 : index
      %c0_130 = arith.constant 0 : index
      %150 = vector.load %arg1[%c0_128, %149, %c3_129, %c0_130] : memref<1x70x35x16xbf16, #tpu.memory_space<vmem>>, vector<1x1x32x16xbf16>
      %151 = vector.shape_cast %150 : vector<1x1x32x16xbf16> to vector<32x16xbf16>
      %c20 = arith.constant 20 : index
      %c0_131 = arith.constant 0 : index
      %c0_132 = arith.constant 0 : index
      %152 = vector.load %arg3[%c20, %c0_131, %c0_132] : memref<49x16x64xbf16, #tpu.memory_space<vmem>>, vector<1x16x64xbf16>
      %153 = vector.shape_cast %152 : vector<1x16x64xbf16> to vector<16x64xbf16>
      %cst_133 = arith.constant dense<0.000000e+00> : vector<32x64xf32>
      %154 = tpu.matmul %151, %153, %cst_133 {dimension_numbers = #tpu.dot_dimension_numbers<[1], [0], [0], [1], [0, 0, 1, 1], [], []>} : vector<32x16xbf16>, vector<16x64xbf16>, vector<32x64xf32> -> vector<32x64xf32>
      %155 = arith.addf %148, %154 : vector<32x64xf32>
      %c2_i32_134 = arith.constant 2 : i32
      %156 = arith.muli %arg6, %c2_i32_134 : i32
      %c3_i32 = arith.constant 3 : i32
      %157 = arith.addi %156, %c3_i32 : i32
      %c0_135 = arith.constant 0 : index
      %158 = arith.index_cast %157 : i32 to index
      %c0_136 = arith.constant 0 : index
      %c0_137 = arith.constant 0 : index
      %159 = vector.load %arg1[%c0_135, %158, %c0_136, %c0_137] : memref<1x70x35x16xbf16, #tpu.memory_space<vmem>>, vector<1x1x32x16xbf16>
      %160 = vector.shape_cast %159 : vector<1x1x32x16xbf16> to vector<32x16xbf16>
      %c21 = arith.constant 21 : index
      %c0_138 = arith.constant 0 : index
      %c0_139 = arith.constant 0 : index
      %161 = vector.load %arg3[%c21, %c0_138, %c0_139] : memref<49x16x64xbf16, #tpu.memory_space<vmem>>, vector<1x16x64xbf16>
      %162 = vector.shape_cast %161 : vector<1x16x64xbf16> to vector<16x64xbf16>
      %cst_140 = arith.constant dense<0.000000e+00> : vector<32x64xf32>
      %163 = tpu.matmul %160, %162, %cst_140 {dimension_numbers = #tpu.dot_dimension_numbers<[1], [0], [0], [1], [0, 0, 1, 1], [], []>} : vector<32x16xbf16>, vector<16x64xbf16>, vector<32x64xf32> -> vector<32x64xf32>
      %164 = arith.addf %155, %163 : vector<32x64xf32>
      %c0_141 = arith.constant 0 : index
      %165 = arith.index_cast %157 : i32 to index
      %c0_142 = arith.constant 0 : index
      %c0_143 = arith.constant 0 : index
      %166 = vector.load %arg2[%c0_141, %165, %c0_142, %c0_143] : memref<1x70x35x16xbf16, #tpu.memory_space<vmem>>, vector<1x1x32x16xbf16>
      %167 = vector.shape_cast %166 : vector<1x1x32x16xbf16> to vector<32x16xbf16>
      %c22 = arith.constant 22 : index
      %c0_144 = arith.constant 0 : index
      %c0_145 = arith.constant 0 : index
      %168 = vector.load %arg3[%c22, %c0_144, %c0_145] : memref<49x16x64xbf16, #tpu.memory_space<vmem>>, vector<1x16x64xbf16>
      %169 = vector.shape_cast %168 : vector<1x16x64xbf16> to vector<16x64xbf16>
      %cst_146 = arith.constant dense<0.000000e+00> : vector<32x64xf32>
      %170 = tpu.matmul %167, %169, %cst_146 {dimension_numbers = #tpu.dot_dimension_numbers<[1], [0], [0], [1], [0, 0, 1, 1], [], []>} : vector<32x16xbf16>, vector<16x64xbf16>, vector<32x64xf32> -> vector<32x64xf32>
      %171 = arith.addf %164, %170 : vector<32x64xf32>
      %c0_147 = arith.constant 0 : index
      %172 = arith.index_cast %157 : i32 to index
      %c1_148 = arith.constant 1 : index
      %c0_149 = arith.constant 0 : index
      %173 = vector.load %arg1[%c0_147, %172, %c1_148, %c0_149] : memref<1x70x35x16xbf16, #tpu.memory_space<vmem>>, vector<1x1x32x16xbf16>
      %174 = vector.shape_cast %173 : vector<1x1x32x16xbf16> to vector<32x16xbf16>
      %c23 = arith.constant 23 : index
      %c0_150 = arith.constant 0 : index
      %c0_151 = arith.constant 0 : index
      %175 = vector.load %arg3[%c23, %c0_150, %c0_151] : memref<49x16x64xbf16, #tpu.memory_space<vmem>>, vector<1x16x64xbf16>
      %176 = vector.shape_cast %175 : vector<1x16x64xbf16> to vector<16x64xbf16>
      %cst_152 = arith.constant dense<0.000000e+00> : vector<32x64xf32>
      %177 = tpu.matmul %174, %176, %cst_152 {dimension_numbers = #tpu.dot_dimension_numbers<[1], [0], [0], [1], [0, 0, 1, 1], [], []>} : vector<32x16xbf16>, vector<16x64xbf16>, vector<32x64xf32> -> vector<32x64xf32>
      %178 = arith.addf %171, %177 : vector<32x64xf32>
      %c0_153 = arith.constant 0 : index
      %179 = arith.index_cast %157 : i32 to index
      %c1_154 = arith.constant 1 : index
      %c0_155 = arith.constant 0 : index
      %180 = vector.load %arg2[%c0_153, %179, %c1_154, %c0_155] : memref<1x70x35x16xbf16, #tpu.memory_space<vmem>>, vector<1x1x32x16xbf16>
      %181 = vector.shape_cast %180 : vector<1x1x32x16xbf16> to vector<32x16xbf16>
      %c24 = arith.constant 24 : index
      %c0_156 = arith.constant 0 : index
      %c0_157 = arith.constant 0 : index
      %182 = vector.load %arg3[%c24, %c0_156, %c0_157] : memref<49x16x64xbf16, #tpu.memory_space<vmem>>, vector<1x16x64xbf16>
      %183 = vector.shape_cast %182 : vector<1x16x64xbf16> to vector<16x64xbf16>
      %cst_158 = arith.constant dense<0.000000e+00> : vector<32x64xf32>
      %184 = tpu.matmul %181, %183, %cst_158 {dimension_numbers = #tpu.dot_dimension_numbers<[1], [0], [0], [1], [0, 0, 1, 1], [], []>} : vector<32x16xbf16>, vector<16x64xbf16>, vector<32x64xf32> -> vector<32x64xf32>
      %185 = arith.addf %178, %184 : vector<32x64xf32>
      %c0_159 = arith.constant 0 : index
      %186 = arith.index_cast %157 : i32 to index
      %c2_160 = arith.constant 2 : index
      %c0_161 = arith.constant 0 : index
      %187 = vector.load %arg1[%c0_159, %186, %c2_160, %c0_161] : memref<1x70x35x16xbf16, #tpu.memory_space<vmem>>, vector<1x1x32x16xbf16>
      %188 = vector.shape_cast %187 : vector<1x1x32x16xbf16> to vector<32x16xbf16>
      %c25 = arith.constant 25 : index
      %c0_162 = arith.constant 0 : index
      %c0_163 = arith.constant 0 : index
      %189 = vector.load %arg3[%c25, %c0_162, %c0_163] : memref<49x16x64xbf16, #tpu.memory_space<vmem>>, vector<1x16x64xbf16>
      %190 = vector.shape_cast %189 : vector<1x16x64xbf16> to vector<16x64xbf16>
      %cst_164 = arith.constant dense<0.000000e+00> : vector<32x64xf32>
      %191 = tpu.matmul %188, %190, %cst_164 {dimension_numbers = #tpu.dot_dimension_numbers<[1], [0], [0], [1], [0, 0, 1, 1], [], []>} : vector<32x16xbf16>, vector<16x64xbf16>, vector<32x64xf32> -> vector<32x64xf32>
      %192 = arith.addf %185, %191 : vector<32x64xf32>
      %c0_165 = arith.constant 0 : index
      %193 = arith.index_cast %157 : i32 to index
      %c2_166 = arith.constant 2 : index
      %c0_167 = arith.constant 0 : index
      %194 = vector.load %arg2[%c0_165, %193, %c2_166, %c0_167] : memref<1x70x35x16xbf16, #tpu.memory_space<vmem>>, vector<1x1x32x16xbf16>
      %195 = vector.shape_cast %194 : vector<1x1x32x16xbf16> to vector<32x16xbf16>
      %c26 = arith.constant 26 : index
      %c0_168 = arith.constant 0 : index
      %c0_169 = arith.constant 0 : index
      %196 = vector.load %arg3[%c26, %c0_168, %c0_169] : memref<49x16x64xbf16, #tpu.memory_space<vmem>>, vector<1x16x64xbf16>
      %197 = vector.shape_cast %196 : vector<1x16x64xbf16> to vector<16x64xbf16>
      %cst_170 = arith.constant dense<0.000000e+00> : vector<32x64xf32>
      %198 = tpu.matmul %195, %197, %cst_170 {dimension_numbers = #tpu.dot_dimension_numbers<[1], [0], [0], [1], [0, 0, 1, 1], [], []>} : vector<32x16xbf16>, vector<16x64xbf16>, vector<32x64xf32> -> vector<32x64xf32>
      %199 = arith.addf %192, %198 : vector<32x64xf32>
      %c0_171 = arith.constant 0 : index
      %200 = arith.index_cast %157 : i32 to index
      %c3_172 = arith.constant 3 : index
      %c0_173 = arith.constant 0 : index
      %201 = vector.load %arg1[%c0_171, %200, %c3_172, %c0_173] : memref<1x70x35x16xbf16, #tpu.memory_space<vmem>>, vector<1x1x32x16xbf16>
      %202 = vector.shape_cast %201 : vector<1x1x32x16xbf16> to vector<32x16xbf16>
      %c27 = arith.constant 27 : index
      %c0_174 = arith.constant 0 : index
      %c0_175 = arith.constant 0 : index
      %203 = vector.load %arg3[%c27, %c0_174, %c0_175] : memref<49x16x64xbf16, #tpu.memory_space<vmem>>, vector<1x16x64xbf16>
      %204 = vector.shape_cast %203 : vector<1x16x64xbf16> to vector<16x64xbf16>
      %cst_176 = arith.constant dense<0.000000e+00> : vector<32x64xf32>
      %205 = tpu.matmul %202, %204, %cst_176 {dimension_numbers = #tpu.dot_dimension_numbers<[1], [0], [0], [1], [0, 0, 1, 1], [], []>} : vector<32x16xbf16>, vector<16x64xbf16>, vector<32x64xf32> -> vector<32x64xf32>
      %206 = arith.addf %199, %205 : vector<32x64xf32>
      %c2_i32_177 = arith.constant 2 : i32
      %207 = arith.muli %arg6, %c2_i32_177 : i32
      %c4_i32 = arith.constant 4 : i32
      %208 = arith.addi %207, %c4_i32 : i32
      %c0_178 = arith.constant 0 : index
      %209 = arith.index_cast %208 : i32 to index
      %c0_179 = arith.constant 0 : index
      %c0_180 = arith.constant 0 : index
      %210 = vector.load %arg1[%c0_178, %209, %c0_179, %c0_180] : memref<1x70x35x16xbf16, #tpu.memory_space<vmem>>, vector<1x1x32x16xbf16>
      %211 = vector.shape_cast %210 : vector<1x1x32x16xbf16> to vector<32x16xbf16>
      %c28 = arith.constant 28 : index
      %c0_181 = arith.constant 0 : index
      %c0_182 = arith.constant 0 : index
      %212 = vector.load %arg3[%c28, %c0_181, %c0_182] : memref<49x16x64xbf16, #tpu.memory_space<vmem>>, vector<1x16x64xbf16>
      %213 = vector.shape_cast %212 : vector<1x16x64xbf16> to vector<16x64xbf16>
      %cst_183 = arith.constant dense<0.000000e+00> : vector<32x64xf32>
      %214 = tpu.matmul %211, %213, %cst_183 {dimension_numbers = #tpu.dot_dimension_numbers<[1], [0], [0], [1], [0, 0, 1, 1], [], []>} : vector<32x16xbf16>, vector<16x64xbf16>, vector<32x64xf32> -> vector<32x64xf32>
      %215 = arith.addf %206, %214 : vector<32x64xf32>
      %c0_184 = arith.constant 0 : index
      %216 = arith.index_cast %208 : i32 to index
      %c0_185 = arith.constant 0 : index
      %c0_186 = arith.constant 0 : index
      %217 = vector.load %arg2[%c0_184, %216, %c0_185, %c0_186] : memref<1x70x35x16xbf16, #tpu.memory_space<vmem>>, vector<1x1x32x16xbf16>
      %218 = vector.shape_cast %217 : vector<1x1x32x16xbf16> to vector<32x16xbf16>
      %c29 = arith.constant 29 : index
      %c0_187 = arith.constant 0 : index
      %c0_188 = arith.constant 0 : index
      %219 = vector.load %arg3[%c29, %c0_187, %c0_188] : memref<49x16x64xbf16, #tpu.memory_space<vmem>>, vector<1x16x64xbf16>
      %220 = vector.shape_cast %219 : vector<1x16x64xbf16> to vector<16x64xbf16>
      %cst_189 = arith.constant dense<0.000000e+00> : vector<32x64xf32>
      %221 = tpu.matmul %218, %220, %cst_189 {dimension_numbers = #tpu.dot_dimension_numbers<[1], [0], [0], [1], [0, 0, 1, 1], [], []>} : vector<32x16xbf16>, vector<16x64xbf16>, vector<32x64xf32> -> vector<32x64xf32>
      %222 = arith.addf %215, %221 : vector<32x64xf32>
      %c0_190 = arith.constant 0 : index
      %223 = arith.index_cast %208 : i32 to index
      %c1_191 = arith.constant 1 : index
      %c0_192 = arith.constant 0 : index
      %224 = vector.load %arg1[%c0_190, %223, %c1_191, %c0_192] : memref<1x70x35x16xbf16, #tpu.memory_space<vmem>>, vector<1x1x32x16xbf16>
      %225 = vector.shape_cast %224 : vector<1x1x32x16xbf16> to vector<32x16xbf16>
      %c30 = arith.constant 30 : index
      %c0_193 = arith.constant 0 : index
      %c0_194 = arith.constant 0 : index
      %226 = vector.load %arg3[%c30, %c0_193, %c0_194] : memref<49x16x64xbf16, #tpu.memory_space<vmem>>, vector<1x16x64xbf16>
      %227 = vector.shape_cast %226 : vector<1x16x64xbf16> to vector<16x64xbf16>
      %cst_195 = arith.constant dense<0.000000e+00> : vector<32x64xf32>
      %228 = tpu.matmul %225, %227, %cst_195 {dimension_numbers = #tpu.dot_dimension_numbers<[1], [0], [0], [1], [0, 0, 1, 1], [], []>} : vector<32x16xbf16>, vector<16x64xbf16>, vector<32x64xf32> -> vector<32x64xf32>
      %229 = arith.addf %222, %228 : vector<32x64xf32>
      %c0_196 = arith.constant 0 : index
      %230 = arith.index_cast %208 : i32 to index
      %c1_197 = arith.constant 1 : index
      %c0_198 = arith.constant 0 : index
      %231 = vector.load %arg2[%c0_196, %230, %c1_197, %c0_198] : memref<1x70x35x16xbf16, #tpu.memory_space<vmem>>, vector<1x1x32x16xbf16>
      %232 = vector.shape_cast %231 : vector<1x1x32x16xbf16> to vector<32x16xbf16>
      %c31 = arith.constant 31 : index
      %c0_199 = arith.constant 0 : index
      %c0_200 = arith.constant 0 : index
      %233 = vector.load %arg3[%c31, %c0_199, %c0_200] : memref<49x16x64xbf16, #tpu.memory_space<vmem>>, vector<1x16x64xbf16>
      %234 = vector.shape_cast %233 : vector<1x16x64xbf16> to vector<16x64xbf16>
      %cst_201 = arith.constant dense<0.000000e+00> : vector<32x64xf32>
      %235 = tpu.matmul %232, %234, %cst_201 {dimension_numbers = #tpu.dot_dimension_numbers<[1], [0], [0], [1], [0, 0, 1, 1], [], []>} : vector<32x16xbf16>, vector<16x64xbf16>, vector<32x64xf32> -> vector<32x64xf32>
      %236 = arith.addf %229, %235 : vector<32x64xf32>
      %c0_202 = arith.constant 0 : index
      %237 = arith.index_cast %208 : i32 to index
      %c2_203 = arith.constant 2 : index
      %c0_204 = arith.constant 0 : index
      %238 = vector.load %arg1[%c0_202, %237, %c2_203, %c0_204] : memref<1x70x35x16xbf16, #tpu.memory_space<vmem>>, vector<1x1x32x16xbf16>
      %239 = vector.shape_cast %238 : vector<1x1x32x16xbf16> to vector<32x16xbf16>
      %c32 = arith.constant 32 : index
      %c0_205 = arith.constant 0 : index
      %c0_206 = arith.constant 0 : index
      %240 = vector.load %arg3[%c32, %c0_205, %c0_206] : memref<49x16x64xbf16, #tpu.memory_space<vmem>>, vector<1x16x64xbf16>
      %241 = vector.shape_cast %240 : vector<1x16x64xbf16> to vector<16x64xbf16>
      %cst_207 = arith.constant dense<0.000000e+00> : vector<32x64xf32>
      %242 = tpu.matmul %239, %241, %cst_207 {dimension_numbers = #tpu.dot_dimension_numbers<[1], [0], [0], [1], [0, 0, 1, 1], [], []>} : vector<32x16xbf16>, vector<16x64xbf16>, vector<32x64xf32> -> vector<32x64xf32>
      %243 = arith.addf %236, %242 : vector<32x64xf32>
      %c0_208 = arith.constant 0 : index
      %244 = arith.index_cast %208 : i32 to index
      %c2_209 = arith.constant 2 : index
      %c0_210 = arith.constant 0 : index
      %245 = vector.load %arg2[%c0_208, %244, %c2_209, %c0_210] : memref<1x70x35x16xbf16, #tpu.memory_space<vmem>>, vector<1x1x32x16xbf16>
      %246 = vector.shape_cast %245 : vector<1x1x32x16xbf16> to vector<32x16xbf16>
      %c33 = arith.constant 33 : index
      %c0_211 = arith.constant 0 : index
      %c0_212 = arith.constant 0 : index
      %247 = vector.load %arg3[%c33, %c0_211, %c0_212] : memref<49x16x64xbf16, #tpu.memory_space<vmem>>, vector<1x16x64xbf16>
      %248 = vector.shape_cast %247 : vector<1x16x64xbf16> to vector<16x64xbf16>
      %cst_213 = arith.constant dense<0.000000e+00> : vector<32x64xf32>
      %249 = tpu.matmul %246, %248, %cst_213 {dimension_numbers = #tpu.dot_dimension_numbers<[1], [0], [0], [1], [0, 0, 1, 1], [], []>} : vector<32x16xbf16>, vector<16x64xbf16>, vector<32x64xf32> -> vector<32x64xf32>
      %250 = arith.addf %243, %249 : vector<32x64xf32>
      %c0_214 = arith.constant 0 : index
      %251 = arith.index_cast %208 : i32 to index
      %c3_215 = arith.constant 3 : index
      %c0_216 = arith.constant 0 : index
      %252 = vector.load %arg1[%c0_214, %251, %c3_215, %c0_216] : memref<1x70x35x16xbf16, #tpu.memory_space<vmem>>, vector<1x1x32x16xbf16>
      %253 = vector.shape_cast %252 : vector<1x1x32x16xbf16> to vector<32x16xbf16>
      %c34 = arith.constant 34 : index
      %c0_217 = arith.constant 0 : index
      %c0_218 = arith.constant 0 : index
      %254 = vector.load %arg3[%c34, %c0_217, %c0_218] : memref<49x16x64xbf16, #tpu.memory_space<vmem>>, vector<1x16x64xbf16>
      %255 = vector.shape_cast %254 : vector<1x16x64xbf16> to vector<16x64xbf16>
      %cst_219 = arith.constant dense<0.000000e+00> : vector<32x64xf32>
      %256 = tpu.matmul %253, %255, %cst_219 {dimension_numbers = #tpu.dot_dimension_numbers<[1], [0], [0], [1], [0, 0, 1, 1], [], []>} : vector<32x16xbf16>, vector<16x64xbf16>, vector<32x64xf32> -> vector<32x64xf32>
      %257 = arith.addf %250, %256 : vector<32x64xf32>
      %c2_i32_220 = arith.constant 2 : i32
      %258 = arith.muli %arg6, %c2_i32_220 : i32
      %c5_i32 = arith.constant 5 : i32
      %259 = arith.addi %258, %c5_i32 : i32
      %c0_221 = arith.constant 0 : index
      %260 = arith.index_cast %259 : i32 to index
      %c0_222 = arith.constant 0 : index
      %c0_223 = arith.constant 0 : index
      %261 = vector.load %arg1[%c0_221, %260, %c0_222, %c0_223] : memref<1x70x35x16xbf16, #tpu.memory_space<vmem>>, vector<1x1x32x16xbf16>
      %262 = vector.shape_cast %261 : vector<1x1x32x16xbf16> to vector<32x16xbf16>
      %c35 = arith.constant 35 : index
      %c0_224 = arith.constant 0 : index
      %c0_225 = arith.constant 0 : index
      %263 = vector.load %arg3[%c35, %c0_224, %c0_225] : memref<49x16x64xbf16, #tpu.memory_space<vmem>>, vector<1x16x64xbf16>
      %264 = vector.shape_cast %263 : vector<1x16x64xbf16> to vector<16x64xbf16>
      %cst_226 = arith.constant dense<0.000000e+00> : vector<32x64xf32>
      %265 = tpu.matmul %262, %264, %cst_226 {dimension_numbers = #tpu.dot_dimension_numbers<[1], [0], [0], [1], [0, 0, 1, 1], [], []>} : vector<32x16xbf16>, vector<16x64xbf16>, vector<32x64xf32> -> vector<32x64xf32>
      %266 = arith.addf %257, %265 : vector<32x64xf32>
      %c0_227 = arith.constant 0 : index
      %267 = arith.index_cast %259 : i32 to index
      %c0_228 = arith.constant 0 : index
      %c0_229 = arith.constant 0 : index
      %268 = vector.load %arg2[%c0_227, %267, %c0_228, %c0_229] : memref<1x70x35x16xbf16, #tpu.memory_space<vmem>>, vector<1x1x32x16xbf16>
      %269 = vector.shape_cast %268 : vector<1x1x32x16xbf16> to vector<32x16xbf16>
      %c36 = arith.constant 36 : index
      %c0_230 = arith.constant 0 : index
      %c0_231 = arith.constant 0 : index
      %270 = vector.load %arg3[%c36, %c0_230, %c0_231] : memref<49x16x64xbf16, #tpu.memory_space<vmem>>, vector<1x16x64xbf16>
      %271 = vector.shape_cast %270 : vector<1x16x64xbf16> to vector<16x64xbf16>
      %cst_232 = arith.constant dense<0.000000e+00> : vector<32x64xf32>
      %272 = tpu.matmul %269, %271, %cst_232 {dimension_numbers = #tpu.dot_dimension_numbers<[1], [0], [0], [1], [0, 0, 1, 1], [], []>} : vector<32x16xbf16>, vector<16x64xbf16>, vector<32x64xf32> -> vector<32x64xf32>
      %273 = arith.addf %266, %272 : vector<32x64xf32>
      %c0_233 = arith.constant 0 : index
      %274 = arith.index_cast %259 : i32 to index
      %c1_234 = arith.constant 1 : index
      %c0_235 = arith.constant 0 : index
      %275 = vector.load %arg1[%c0_233, %274, %c1_234, %c0_235] : memref<1x70x35x16xbf16, #tpu.memory_space<vmem>>, vector<1x1x32x16xbf16>
      %276 = vector.shape_cast %275 : vector<1x1x32x16xbf16> to vector<32x16xbf16>
      %c37 = arith.constant 37 : index
      %c0_236 = arith.constant 0 : index
      %c0_237 = arith.constant 0 : index
      %277 = vector.load %arg3[%c37, %c0_236, %c0_237] : memref<49x16x64xbf16, #tpu.memory_space<vmem>>, vector<1x16x64xbf16>
      %278 = vector.shape_cast %277 : vector<1x16x64xbf16> to vector<16x64xbf16>
      %cst_238 = arith.constant dense<0.000000e+00> : vector<32x64xf32>
      %279 = tpu.matmul %276, %278, %cst_238 {dimension_numbers = #tpu.dot_dimension_numbers<[1], [0], [0], [1], [0, 0, 1, 1], [], []>} : vector<32x16xbf16>, vector<16x64xbf16>, vector<32x64xf32> -> vector<32x64xf32>
      %280 = arith.addf %273, %279 : vector<32x64xf32>
      %c0_239 = arith.constant 0 : index
      %281 = arith.index_cast %259 : i32 to index
      %c1_240 = arith.constant 1 : index
      %c0_241 = arith.constant 0 : index
      %282 = vector.load %arg2[%c0_239, %281, %c1_240, %c0_241] : memref<1x70x35x16xbf16, #tpu.memory_space<vmem>>, vector<1x1x32x16xbf16>
      %283 = vector.shape_cast %282 : vector<1x1x32x16xbf16> to vector<32x16xbf16>
      %c38 = arith.constant 38 : index
      %c0_242 = arith.constant 0 : index
      %c0_243 = arith.constant 0 : index
      %284 = vector.load %arg3[%c38, %c0_242, %c0_243] : memref<49x16x64xbf16, #tpu.memory_space<vmem>>, vector<1x16x64xbf16>
      %285 = vector.shape_cast %284 : vector<1x16x64xbf16> to vector<16x64xbf16>
      %cst_244 = arith.constant dense<0.000000e+00> : vector<32x64xf32>
      %286 = tpu.matmul %283, %285, %cst_244 {dimension_numbers = #tpu.dot_dimension_numbers<[1], [0], [0], [1], [0, 0, 1, 1], [], []>} : vector<32x16xbf16>, vector<16x64xbf16>, vector<32x64xf32> -> vector<32x64xf32>
      %287 = arith.addf %280, %286 : vector<32x64xf32>
      %c0_245 = arith.constant 0 : index
      %288 = arith.index_cast %259 : i32 to index
      %c2_246 = arith.constant 2 : index
      %c0_247 = arith.constant 0 : index
      %289 = vector.load %arg1[%c0_245, %288, %c2_246, %c0_247] : memref<1x70x35x16xbf16, #tpu.memory_space<vmem>>, vector<1x1x32x16xbf16>
      %290 = vector.shape_cast %289 : vector<1x1x32x16xbf16> to vector<32x16xbf16>
      %c39 = arith.constant 39 : index
      %c0_248 = arith.constant 0 : index
      %c0_249 = arith.constant 0 : index
      %291 = vector.load %arg3[%c39, %c0_248, %c0_249] : memref<49x16x64xbf16, #tpu.memory_space<vmem>>, vector<1x16x64xbf16>
      %292 = vector.shape_cast %291 : vector<1x16x64xbf16> to vector<16x64xbf16>
      %cst_250 = arith.constant dense<0.000000e+00> : vector<32x64xf32>
      %293 = tpu.matmul %290, %292, %cst_250 {dimension_numbers = #tpu.dot_dimension_numbers<[1], [0], [0], [1], [0, 0, 1, 1], [], []>} : vector<32x16xbf16>, vector<16x64xbf16>, vector<32x64xf32> -> vector<32x64xf32>
      %294 = arith.addf %287, %293 : vector<32x64xf32>
      %c0_251 = arith.constant 0 : index
      %295 = arith.index_cast %259 : i32 to index
      %c2_252 = arith.constant 2 : index
      %c0_253 = arith.constant 0 : index
      %296 = vector.load %arg2[%c0_251, %295, %c2_252, %c0_253] : memref<1x70x35x16xbf16, #tpu.memory_space<vmem>>, vector<1x1x32x16xbf16>
      %297 = vector.shape_cast %296 : vector<1x1x32x16xbf16> to vector<32x16xbf16>
      %c40 = arith.constant 40 : index
      %c0_254 = arith.constant 0 : index
      %c0_255 = arith.constant 0 : index
      %298 = vector.load %arg3[%c40, %c0_254, %c0_255] : memref<49x16x64xbf16, #tpu.memory_space<vmem>>, vector<1x16x64xbf16>
      %299 = vector.shape_cast %298 : vector<1x16x64xbf16> to vector<16x64xbf16>
      %cst_256 = arith.constant dense<0.000000e+00> : vector<32x64xf32>
      %300 = tpu.matmul %297, %299, %cst_256 {dimension_numbers = #tpu.dot_dimension_numbers<[1], [0], [0], [1], [0, 0, 1, 1], [], []>} : vector<32x16xbf16>, vector<16x64xbf16>, vector<32x64xf32> -> vector<32x64xf32>
      %301 = arith.addf %294, %300 : vector<32x64xf32>
      %c0_257 = arith.constant 0 : index
      %302 = arith.index_cast %259 : i32 to index
      %c3_258 = arith.constant 3 : index
      %c0_259 = arith.constant 0 : index
      %303 = vector.load %arg1[%c0_257, %302, %c3_258, %c0_259] : memref<1x70x35x16xbf16, #tpu.memory_space<vmem>>, vector<1x1x32x16xbf16>
      %304 = vector.shape_cast %303 : vector<1x1x32x16xbf16> to vector<32x16xbf16>
      %c41 = arith.constant 41 : index
      %c0_260 = arith.constant 0 : index
      %c0_261 = arith.constant 0 : index
      %305 = vector.load %arg3[%c41, %c0_260, %c0_261] : memref<49x16x64xbf16, #tpu.memory_space<vmem>>, vector<1x16x64xbf16>
      %306 = vector.shape_cast %305 : vector<1x16x64xbf16> to vector<16x64xbf16>
      %cst_262 = arith.constant dense<0.000000e+00> : vector<32x64xf32>
      %307 = tpu.matmul %304, %306, %cst_262 {dimension_numbers = #tpu.dot_dimension_numbers<[1], [0], [0], [1], [0, 0, 1, 1], [], []>} : vector<32x16xbf16>, vector<16x64xbf16>, vector<32x64xf32> -> vector<32x64xf32>
      %308 = arith.addf %301, %307 : vector<32x64xf32>
      %c2_i32_263 = arith.constant 2 : i32
      %309 = arith.muli %arg6, %c2_i32_263 : i32
      %c6_i32 = arith.constant 6 : i32
      %310 = arith.addi %309, %c6_i32 : i32
      %c0_264 = arith.constant 0 : index
      %311 = arith.index_cast %310 : i32 to index
      %c0_265 = arith.constant 0 : index
      %c0_266 = arith.constant 0 : index
      %312 = vector.load %arg1[%c0_264, %311, %c0_265, %c0_266] : memref<1x70x35x16xbf16, #tpu.memory_space<vmem>>, vector<1x1x32x16xbf16>
      %313 = vector.shape_cast %312 : vector<1x1x32x16xbf16> to vector<32x16xbf16>
      %c42 = arith.constant 42 : index
      %c0_267 = arith.constant 0 : index
      %c0_268 = arith.constant 0 : index
      %314 = vector.load %arg3[%c42, %c0_267, %c0_268] : memref<49x16x64xbf16, #tpu.memory_space<vmem>>, vector<1x16x64xbf16>
      %315 = vector.shape_cast %314 : vector<1x16x64xbf16> to vector<16x64xbf16>
      %cst_269 = arith.constant dense<0.000000e+00> : vector<32x64xf32>
      %316 = tpu.matmul %313, %315, %cst_269 {dimension_numbers = #tpu.dot_dimension_numbers<[1], [0], [0], [1], [0, 0, 1, 1], [], []>} : vector<32x16xbf16>, vector<16x64xbf16>, vector<32x64xf32> -> vector<32x64xf32>
      %317 = arith.addf %308, %316 : vector<32x64xf32>
      %c0_270 = arith.constant 0 : index
      %318 = arith.index_cast %310 : i32 to index
      %c0_271 = arith.constant 0 : index
      %c0_272 = arith.constant 0 : index
      %319 = vector.load %arg2[%c0_270, %318, %c0_271, %c0_272] : memref<1x70x35x16xbf16, #tpu.memory_space<vmem>>, vector<1x1x32x16xbf16>
      %320 = vector.shape_cast %319 : vector<1x1x32x16xbf16> to vector<32x16xbf16>
      %c43 = arith.constant 43 : index
      %c0_273 = arith.constant 0 : index
      %c0_274 = arith.constant 0 : index
      %321 = vector.load %arg3[%c43, %c0_273, %c0_274] : memref<49x16x64xbf16, #tpu.memory_space<vmem>>, vector<1x16x64xbf16>
      %322 = vector.shape_cast %321 : vector<1x16x64xbf16> to vector<16x64xbf16>
      %cst_275 = arith.constant dense<0.000000e+00> : vector<32x64xf32>
      %323 = tpu.matmul %320, %322, %cst_275 {dimension_numbers = #tpu.dot_dimension_numbers<[1], [0], [0], [1], [0, 0, 1, 1], [], []>} : vector<32x16xbf16>, vector<16x64xbf16>, vector<32x64xf32> -> vector<32x64xf32>
      %324 = arith.addf %317, %323 : vector<32x64xf32>
      %c0_276 = arith.constant 0 : index
      %325 = arith.index_cast %310 : i32 to index
      %c1_277 = arith.constant 1 : index
      %c0_278 = arith.constant 0 : index
      %326 = vector.load %arg1[%c0_276, %325, %c1_277, %c0_278] : memref<1x70x35x16xbf16, #tpu.memory_space<vmem>>, vector<1x1x32x16xbf16>
      %327 = vector.shape_cast %326 : vector<1x1x32x16xbf16> to vector<32x16xbf16>
      %c44 = arith.constant 44 : index
      %c0_279 = arith.constant 0 : index
      %c0_280 = arith.constant 0 : index
      %328 = vector.load %arg3[%c44, %c0_279, %c0_280] : memref<49x16x64xbf16, #tpu.memory_space<vmem>>, vector<1x16x64xbf16>
      %329 = vector.shape_cast %328 : vector<1x16x64xbf16> to vector<16x64xbf16>
      %cst_281 = arith.constant dense<0.000000e+00> : vector<32x64xf32>
      %330 = tpu.matmul %327, %329, %cst_281 {dimension_numbers = #tpu.dot_dimension_numbers<[1], [0], [0], [1], [0, 0, 1, 1], [], []>} : vector<32x16xbf16>, vector<16x64xbf16>, vector<32x64xf32> -> vector<32x64xf32>
      %331 = arith.addf %324, %330 : vector<32x64xf32>
      %c0_282 = arith.constant 0 : index
      %332 = arith.index_cast %310 : i32 to index
      %c1_283 = arith.constant 1 : index
      %c0_284 = arith.constant 0 : index
      %333 = vector.load %arg2[%c0_282, %332, %c1_283, %c0_284] : memref<1x70x35x16xbf16, #tpu.memory_space<vmem>>, vector<1x1x32x16xbf16>
      %334 = vector.shape_cast %333 : vector<1x1x32x16xbf16> to vector<32x16xbf16>
      %c45 = arith.constant 45 : index
      %c0_285 = arith.constant 0 : index
      %c0_286 = arith.constant 0 : index
      %335 = vector.load %arg3[%c45, %c0_285, %c0_286] : memref<49x16x64xbf16, #tpu.memory_space<vmem>>, vector<1x16x64xbf16>
      %336 = vector.shape_cast %335 : vector<1x16x64xbf16> to vector<16x64xbf16>
      %cst_287 = arith.constant dense<0.000000e+00> : vector<32x64xf32>
      %337 = tpu.matmul %334, %336, %cst_287 {dimension_numbers = #tpu.dot_dimension_numbers<[1], [0], [0], [1], [0, 0, 1, 1], [], []>} : vector<32x16xbf16>, vector<16x64xbf16>, vector<32x64xf32> -> vector<32x64xf32>
      %338 = arith.addf %331, %337 : vector<32x64xf32>
      %c0_288 = arith.constant 0 : index
      %339 = arith.index_cast %310 : i32 to index
      %c2_289 = arith.constant 2 : index
      %c0_290 = arith.constant 0 : index
      %340 = vector.load %arg1[%c0_288, %339, %c2_289, %c0_290] : memref<1x70x35x16xbf16, #tpu.memory_space<vmem>>, vector<1x1x32x16xbf16>
      %341 = vector.shape_cast %340 : vector<1x1x32x16xbf16> to vector<32x16xbf16>
      %c46 = arith.constant 46 : index
      %c0_291 = arith.constant 0 : index
      %c0_292 = arith.constant 0 : index
      %342 = vector.load %arg3[%c46, %c0_291, %c0_292] : memref<49x16x64xbf16, #tpu.memory_space<vmem>>, vector<1x16x64xbf16>
      %343 = vector.shape_cast %342 : vector<1x16x64xbf16> to vector<16x64xbf16>
      %cst_293 = arith.constant dense<0.000000e+00> : vector<32x64xf32>
      %344 = tpu.matmul %341, %343, %cst_293 {dimension_numbers = #tpu.dot_dimension_numbers<[1], [0], [0], [1], [0, 0, 1, 1], [], []>} : vector<32x16xbf16>, vector<16x64xbf16>, vector<32x64xf32> -> vector<32x64xf32>
      %345 = arith.addf %338, %344 : vector<32x64xf32>
      %c0_294 = arith.constant 0 : index
      %346 = arith.index_cast %310 : i32 to index
      %c2_295 = arith.constant 2 : index
      %c0_296 = arith.constant 0 : index
      %347 = vector.load %arg2[%c0_294, %346, %c2_295, %c0_296] : memref<1x70x35x16xbf16, #tpu.memory_space<vmem>>, vector<1x1x32x16xbf16>
      %348 = vector.shape_cast %347 : vector<1x1x32x16xbf16> to vector<32x16xbf16>
      %c47 = arith.constant 47 : index
      %c0_297 = arith.constant 0 : index
      %c0_298 = arith.constant 0 : index
      %349 = vector.load %arg3[%c47, %c0_297, %c0_298] : memref<49x16x64xbf16, #tpu.memory_space<vmem>>, vector<1x16x64xbf16>
      %350 = vector.shape_cast %349 : vector<1x16x64xbf16> to vector<16x64xbf16>
      %cst_299 = arith.constant dense<0.000000e+00> : vector<32x64xf32>
      %351 = tpu.matmul %348, %350, %cst_299 {dimension_numbers = #tpu.dot_dimension_numbers<[1], [0], [0], [1], [0, 0, 1, 1], [], []>} : vector<32x16xbf16>, vector<16x64xbf16>, vector<32x64xf32> -> vector<32x64xf32>
      %352 = arith.addf %345, %351 : vector<32x64xf32>
      %c0_300 = arith.constant 0 : index
      %353 = arith.index_cast %310 : i32 to index
      %c3_301 = arith.constant 3 : index
      %c0_302 = arith.constant 0 : index
      %354 = vector.load %arg1[%c0_300, %353, %c3_301, %c0_302] : memref<1x70x35x16xbf16, #tpu.memory_space<vmem>>, vector<1x1x32x16xbf16>
      %355 = vector.shape_cast %354 : vector<1x1x32x16xbf16> to vector<32x16xbf16>
      %c48 = arith.constant 48 : index
      %c0_303 = arith.constant 0 : index
      %c0_304 = arith.constant 0 : index
      %356 = vector.load %arg3[%c48, %c0_303, %c0_304] : memref<49x16x64xbf16, #tpu.memory_space<vmem>>, vector<1x16x64xbf16>
      %357 = vector.shape_cast %356 : vector<1x16x64xbf16> to vector<16x64xbf16>
      %cst_305 = arith.constant dense<0.000000e+00> : vector<32x64xf32>
      %358 = tpu.matmul %355, %357, %cst_305 {dimension_numbers = #tpu.dot_dimension_numbers<[1], [0], [0], [1], [0, 0, 1, 1], [], []>} : vector<32x16xbf16>, vector<16x64xbf16>, vector<32x64xf32> -> vector<32x64xf32>
      %359 = arith.addf %352, %358 : vector<32x64xf32>
      %360 = vector.broadcast %0 : vector<1x64xf32> to vector<32x64xf32>
      %361 = arith.addf %359, %360 : vector<32x64xf32>
      %cst_306 = arith.constant 0.000000e+00 : f32
      %362 = vector.broadcast %cst_306 : f32 to vector<32x64xf32>
      %363 = arith.maximumf %361, %362 : vector<32x64xf32>
      %364 = vector.shape_cast %363 : vector<32x64xf32> to vector<1x32x64xf32>
      %365 = arith.truncf %364 : vector<1x32x64xf32> to vector<1x32x64xbf16>
      %c0_307 = arith.constant 0 : index
      %366 = arith.index_cast %arg6 : i32 to index
      %c0_308 = arith.constant 0 : index
      %c0_309 = arith.constant 0 : index
      %367 = vector.load %arg5[%c0_307, %366, %c0_308, %c0_309] : memref<1x32x32x64xbf16, #tpu.memory_space<vmem>>, vector<1x1x32x64xbf16>
      %368 = vector.shape_cast %367 : vector<1x1x32x64xbf16> to vector<1x32x64xbf16>
      %369 = vector.shape_cast %365 : vector<1x32x64xbf16> to vector<1x1x32x64xbf16>
      tpu.vector_store %arg5[%c0_307, %366, %c0_308, %c0_309], %369 {strides = array<i32>} : memref<1x32x32x64xbf16, #tpu.memory_space<vmem>>, vector<1x1x32x64xbf16>,
    }
    %c32_i32_1 = arith.constant 32 : i32
    return
  }
  func.func @transform_0(%arg0: i32) -> (i32, i32, i32, i32) {
    %c0_i32 = arith.constant 0 : i32
    %c0_i32_0 = arith.constant 0 : i32
    %c0_i32_1 = arith.constant 0 : i32
    %c0_i32_2 = arith.constant 0 : i32
    return %arg0, %c0_i32, %c0_i32_0, %c0_i32_1 : i32, i32, i32, i32
  }
  func.func @transform_1(%arg0: i32) -> (i32, i32, i32, i32) {
    %c0_i32 = arith.constant 0 : i32
    %c0_i32_0 = arith.constant 0 : i32
    %c0_i32_1 = arith.constant 0 : i32
    %c0_i32_2 = arith.constant 0 : i32
    return %arg0, %c0_i32, %c0_i32_0, %c0_i32_1 : i32, i32, i32, i32
  }
  func.func @transform_2(%arg0: i32) -> (i32, i32, i32) {
    %c0_i32 = arith.constant 0 : i32
    %c0_i32_0 = arith.constant 0 : i32
    %c0_i32_1 = arith.constant 0 : i32
    %c0_i32_2 = arith.constant 0 : i32
    return %c0_i32, %c0_i32_0, %c0_i32_1 : i32, i32, i32
  }
  func.func @transform_3(%arg0: i32) -> (i32, i32) {
    %c0_i32 = arith.constant 0 : i32
    %c0_i32_0 = arith.constant 0 : i32
    %c0_i32_1 = arith.constant 0 : i32
    return %c0_i32, %c0_i32_0 : i32, i32
  }
  func.func @transform_4(%arg0: i32) -> (i32, i32, i32, i32) {
    %c0_i32 = arith.constant 0 : i32
    %c0_i32_0 = arith.constant 0 : i32
    %c0_i32_1 = arith.constant 0 : i32
    %c0_i32_2 = arith.constant 0 : i32
    return %arg0, %c0_i32, %c0_i32_0, %c0_i32_1 : i32, i32, i32, i32
  }
}

</mosaic_0001>

<bundles_post_ra>
// kernel: conv_bn_act.1
= control target key start
LH: loop header
LB: loop body
LE: loop exit
PB: predicated region body
PF: predicated region fallthrough
CT: control target
= control target key end

     0   :  { %9 = vsyncpa [#allocation3], 0  ;;  %s7056_s0 = inlined_call_operand.vmem [shape: bf16[4,70,35,16], index: 0, kind: input, shape index: {}]   ;;  %s7057_s1 = inlined_call_operand.vmem [shape: bf16[4,70,35,16], index: 1, kind: input, shape index: {}]   ;;  %s7058_s2 = inlined_call_operand.vmem [shape: bf16[49,16,64], index: 2, kind: input, shape index: {}]   ;;  %s7059_s3 = inlined_call_operand.vmem [shape: f32[1,64], index: 3, kind: input, shape index: {}]   ;;  %s7060_s4 = inlined_call_operand.hbm [shape: bf16[4,32,32,64], index: 4, kind: output, shape index: {}]  }
   0x1   :  { %11 = vsyncpa [#allocation3 + $0x1], 0  ;;  %s6247_s15 = smov 0   ;;  %s6249_s16 = smov 0  }
   0x2   :  { %s6251_s17 = smov 0   ;;  %s6253_s18 = smov 0  }
   0x3 LB: > { %s6268_s19 = sadd.s32 4294967295, %s6213_s18   ;;  %s4807_s20 = sadd.s32 4294967294, %s6213_s18   ;;  %s6213_s18 = sphi %s6253_s18, %s7066_s18   ;;  %s6209_s17 = sphi %s6251_s17, %s7065_s17   ;;  %s6205_s16 = sphi %s6249_s16, %s7064_s16   ;;  %s6201_s15 = sphi %s6247_s15, %s7063_s15  }
   0x4   : > { %s6272_s21 = sadd.s32 1, %s6213_s18   ;;  %s118_s22 = sadd.s32 1, %s6209_s17 }
   0x5   : > { %s115_s23 = ssub.s32 %s6213_s18, %s6272_s21  ;;  %p128_p0 = scmp.ne.s32.totalorder %s6209_s17, %s6205_s16 }
   0x6   : > { %p116_p1 = scmp.eq.s32.totalorder %s115_s23, 0  ;;  %p129_p2 = scmp.eq.s32.totalorder %s6268_s19, 3 }
   0x7   : > { %p134_p3 = scmp.ne.s32.totalorder %s6205_s16, %s6201_s15  ;;  %p135_p4 = scmp.eq.s32.totalorder %s4807_s20, 3 }
   0x8   : > { %s6283_s24 = scalar_select %p116_p1, %s6209_s17, %s118_s22  }
   0x9   : > { %p6285_p5 = por %p129_p2, %p128_p0  ;;  %p6289_p6 = por %p135_p4, %p134_p3 }
   0xa   : > { %p4810_p7 = scmp.ge.s32.totalorder %s6213_s18, 1  ;;  %p175_p8 = scmp.lt.s32.totalorder %s6213_s18, 5 }
   0xc   : > { %p176_p9 = pnand %p4810_p7, %p175_p8 }
   0xd   : > { %s203_s27 = sand.u32 (!%p176_p9), 1, %s6205_s16   ;;  %p206_p10 = scmp.lt.s32.totalorder (!%p176_p9), %s6268_s19, 3  ;;  %v6300_v0 = vld [vmem:[%s7059_s3] ss:$0 sm:$0xff] (!%p176_p9) }
   0xe   : > { %179 = sbr.rel (%p176_p9) target bundleno = 567 (0x237), region = 36  ;;  %s6304_s30 = sshll.u32 (!%p176_p9), %s203_s27, 9 }
   0xf   : > { %s205_s13 = scalar_lea.vmem (!%p176_p9), [#allocation2], %s6304_s30  ;;  %s6318_s14 = smov (!%p176_p9), 0  }
  0x15   : > { %s207_s5 = scalar_select %p206_p10, %s6268_s19, 3 }
  0x17   : > { %s5955_s6 = smul.u32 1400, %s207_s5 }
  0x19   : > { %s6310_s9 = scalar_lea.vmem %s7056_s0, %s5955_s6  ;;  %s6315_s12 = scalar_lea.vmem %s7057_s1, %s5955_s6 }
  0x1a LB: >> { %v6005_v1 = vld [vmem:[%s7058_s2 + $0x8] sm:$0xff]   ;;  %v6008_v2 = vld [vmem:[%s7058_s2 + $0xc0] sm:$0xff]   ;;  %s5314_s29 = smul.u32 40, %s6217_s14  ;;  %vm259_vm0 = vcmask 130048   ;;  %vm407_vm1 = vsmask.f32 7424  ;;  %s6217_s14 = sphi %s6318_s14, %s223_s14  }
  0x1b   : >> { %5469 = vmatprep.subr.bf16.mxu1 %v6005_v1  ;;  %v6011_v3 = vld [vmem:[%s7058_s2 + $0xc8] sm:$0xff]   ;;  %5613 = vmatprep.subr.bf16.mxu0 %v6008_v2  ;;  %v6013_v4 = vld [vmem:[%s7058_s2] sm:$0xff]   ;;  %vm606_vm2 = vcmask 1046528   ;;  %v6020_v29 = vld [vmem:[%s7058_s2 + $0x10] sm:$0xff]   ;;  %vm761_vm3 = vsmask.f32 6400 }
  0x1c   : >> { %5470 = vmatpush3.bf16.msra.mxu1 %v6005_v1  ;;  %s6334_s7 = scalar_lea.vmem %s6315_s12, %s5314_s29  ;;  %5614 = vmatpush3.bf16.msra.mxu0 %v6008_v2  ;;  %s6341_s11 = scalar_lea.vmem %s6310_s9, %s5314_s29  ;;  %v6018_v33 = vld [vmem:[%s7058_s2 + $0xd0] sm:$0xff]   ;;  %v6026_v52 = vld [vmem:[%s7058_s2 + $0x18] sm:$0xff]   ;;  %vm4655_vm4 = vcmask 519168  }
  0x1d   : >> { %v6006_v5 = vld [vmem:[%s6334_s7] sm:$0xff]   ;;  %5619 = vmatprep.subr.bf16.mxu0 %v6011_v3  ;;  %v6007_v6 = vld [vmem:[%s6334_s7 + $0x8] sm:$0xff]   ;;  %5475 = vmatprep.subr.bf16.mxu1 %v6013_v4  ;;  %v5049_v7 = vld [vmem:[%s6334_s7 + $0x3c] sm:$0xf] }
  0x1e   : >> { %5471 = vmatprep.mubr.msk.bf16.mxu1 %vm259_vm0, %v6006_v5  ;;  %v5050_v8 = vld [vmem:[%s6334_s7 + $0x40] sm:$0xf]  ;;  %v6349_v10 = vld [vmem:[%s6334_s7 + $0x44] sm:$0xff]   ;;  %v6352_v11 = vld [vmem:[%s6334_s7 + $0x4c] ss:$0 sps:$4 sm:$0x11]  }
  0x1f   : >> { %5472 = vmatmul.mubr.msk.bf16.vlgmr.msra.gmra.mrb[0].mxu1 %vm259_vm0, %v6007_v6  ;;  %v5056_v9 = vcombine.low %v5049_v7, %v5050_v8  ;;  %v6014_v12 = vld [vmem:[%s6341_s11] sm:$0xff]   ;;  %v2411_v15 = vshll.u32 %v6349_v10, 16  ;;  %v2415_v16 = vshrl.u32 %v6349_v10, 16  ;;  %v2419_v17 = vshll.u32 %v6352_v11, 16  ;;  %v5062_v23 = vld [vmem:[%s6341_s11 + $0x3c] sm:$0xe] }
  0x20   : >> { %5476 = vmatpush3.bf16.msra.mxu1 %v6013_v4  ;;  %5477 = vmatprep.mubr.msk.bf16.mxu1 %vm259_vm0, %v6014_v12  ;;  %v5037_v20 = vld [vmem:[%s6341_s11 + $0x40] sm:$0xf]  ;;  %v6361_v22 = vld [vmem:[%s6341_s11 + $0x44] sm:$0xff]   ;;  %v6019_v34 = vld [vmem:[%s6341_s11 + $0x4c] ss:$0 sps:$4 sm:$0x11]  }
  0x21   : >> { %v2404_v13 = vshrl.u32 %v5056_v9, 16  ;;  %v2406_v14 = vshll.u32 %v5056_v9, 16  ;;  %v2413_v19 = vrot.slane %v2411_v15, 1  ;;  %v2421_v21 = vrot.slane %v2419_v17, 1  ;;  %v6015_v26 = vld [vmem:[%s6341_s11 + $0x8] sm:$0xff]   ;;  %5481 = vmatprep.subr.bf16.mxu1 %v6020_v29  ;;  %v6025_v5 = vld [vmem:[%s7058_s2 + $0xd8] sm:$0xff]  }
  0x22   : >> { %v6365_v27 = vcombine.low %v5062_v23, %v5037_v20  ;;  %v2496_v28 = vrot.slane %v6361_v22, 1  ;;  %v386_v35 = vld [vmem:[%s6341_s11] sm:$0xf]  ;;  %v6380_v36 = vld [vmem:[%s6341_s11 + $0x4] sm:$0xf]  ;;  %v6385_v38 = vld [vmem:[%s6341_s11 + $0x8] sm:$0xff]  }
  0x23   : >> { %v2408_v18 = vrot.slane %v2406_v14, 1  ;;  %v2417_v25 = vor.u32 %v2415_v16, %v2413_v19  ;;  %v4832_v37 = vcombine.low %v386_v35, %v6380_v36  ;;  %v6390_v40 = vld [vmem:[%s6341_s11 + $0x10] ss:$0 sps:$4 sm:$0x11]   ;;  %v416_v43 = vshll.u32 %v6385_v38, 16  ;;  %v6406_v54 = vld [vmem:[%s6334_s7 + $0x8] sm:$0xff]  }
  0x24   : >> { %v2495_v32 = vrot.slane %v6365_v27, 1  ;;  %v5069_v44 = vld [vmem:[%s6334_s7 + $0x3c] sm:$0xe]  ;;  %v420_v45 = vshrl.u32 %v6385_v38, 16  ;;  %v424_v46 = vshll.u32 %v6390_v40, 16  ;;  %v2498_v50 = vrot.slane %v6019_v34, 1 }
  0x25   : >> { %v2409_v24 = vor.u32 %v2408_v18, %v2404_v13  ;;  %v2422_v31 = vsel %vm407_vm1, %v2417_v25, %v2421_v21  ;;  %v409_v41 = vshrl.u32 %v4832_v37, 16  ;;  %v411_v42 = vshll.u32 %v4832_v37, 16  ;;  %v493_v53 = vld [vmem:[%s6334_s7] sm:$0xf]  ;;  %v6409_v56 = vld [vmem:[%s6334_s7 + $0x4] sm:$0xf] }
  0x26   : >> { %v2497_v39 = vsel %vm606_vm2, %v2495_v32, %v2496_v28  ;;  %v5072_v47 = vcombine.low %v5069_v44, %v5050_v8  ;;  %v418_v49 = vrot.slane %v416_v43, 1  ;;  %v2573_v51 = vrot.slane %v6349_v10, 1  ;;  %v6428_v13 = vld [vmem:[%s6334_s7 + $0x10] ss:$0 sps:$4 sm:$0x11]   ;;  %v6032_v17 = vld [vmem:[%s7058_s2 + $0x20] sm:$0xff]  }
  0x27   : >> { %v2414_v30 = vsel %vm407_vm1, %v2409_v24, %v2413_v19  ;;  %v413_v48 = vrot.slane %v411_v42, 1  ;;  %v4840_v58 = vcombine.low %v493_v53, %v6409_v56  ;;  %v522_v59 = vshll.u32 %v6406_v54, 16  ;;  %v599_v18 = vld [vmem:[%s6341_s11] sm:$0xe] }
  0x28   : >> { %5615 = vmatprep.mubr.msk.bf16.mxu0 %vm259_vm0, %v2414_v30  ;;  %v2572_v57 = vrot.slane %v5072_v47, 1  ;;  %v422_v61 = vor.u32 %v420_v45, %v418_v49  ;;  %v426_v62 = vrot.slane %v424_v46, 1  ;;  %v2305_v2 = vshll.u32 %v6361_v22, 16  ;;  %v677_v44 = vld [vmem:[%s6334_s7] sm:$0xe] }
  0x29   : >> { %5616 = vmatmul.mubr.msk.bf16.vlgmr.msra.gmra.mrb[0].mxu0 %vm259_vm0, %v2422_v31  ;;  %v414_v55 = vor.u32 %v413_v48, %v409_v41  ;;  %v515_v63 = vshrl.u32 %v4840_v58, 16  ;;  %v517_v1 = vshll.u32 %v4840_v58, 16  ;;  %v2499_v4 = vsel %vm606_vm2, %v2496_v28, %v2498_v50  ;;  %v6037_v41 = vld [vmem:[%s7058_s2 + $0x28] sm:$0xff]  }
  0x2a   : >> { %5620 = vmatpush3.bf16.msra.mxu0 %v6011_v3  ;;  %5621 = vmatprep.mubr.msk.bf16.mxu0 %vm259_vm0, %v2497_v39  ;;  %v2309_v3 = vshrl.u32 %v6361_v22, 16  ;;  %v524_v6 = vrot.slane %v522_v59, 1  ;;  %v2650_v7 = vshrl.u32 %v6365_v27, 16  ;;  %v2574_v8 = vsel %vm606_vm2, %v2572_v57, %v2573_v51  ;;  %v6035_v57 = vld [vmem:[%s7058_s2 + $0xe8] sm:$0xff]  }
  0x2b   : >> { %5478 = vmatmul.mubr.msk.bf16.vlgmr.msra.gmra.mrb[0].mxu1 %vm259_vm0, %v6015_v26  ;;  %5625 = vmatprep.subr.bf16.mxu0 %v6018_v33  ;;  %v419_v60 = vsel %vm407_vm1, %v414_v55, %v418_v49  ;;  %v519_v9 = vrot.slane %v517_v1, 1  ;;  %v2653_v10 = vshll.u32 %v6365_v27, 16  ;;  %v427_v12 = vsel %vm407_vm1, %v422_v61, %v426_v62  ;;  %v6031_v27 = vld [vmem:[%s6341_s11 + $0x4c] ss:$0 sps:$4 sm:$0x33]   ;;  %v6034_v55 = vld [vmem:[%s6341_s11 + $0x50] sm:$0xff]  }
  0x2c   : >> { %5482 = vmatpush3.bf16.msra.mxu1 %v6020_v29  ;;  %5483 = vmatprep.mubr.msk.bf16.mxu1 %vm259_vm0, %v419_v60  ;;  %v2657_v15 = vrot.slane %v2309_v3, 1  ;;  %v2658_v16 = vrot.slane %v2305_v2, 2  ;;  %v2652_v20 = vrot.slane %v2650_v7, 1  ;;  %v526_v23 = vshrl.u32 %v6406_v54, 16  ;;  %v5109_v60 = vld [vmem:[%s6341_s11 + $0x50] sm:$0xf] }
  0x2d   : >> { %5487 = vmatprep.subr.bf16.mxu1 %v6026_v52  ;;  %v520_v14 = vor.u32 %v519_v9, %v515_v63  ;;  %v2655_v21 = vrot.slane %v2653_v10, 2  ;;  %v530_v24 = vshll.u32 %v6428_v13, 16  ;;  %v4848_v25 = vcombine.low %v599_v18, %v6380_v36  ;;  %v6030_v36 = vld [vmem:[%s7058_s2 + $0xe0] sm:$0xff]   ;;  %v6483_v61 = vld [vmem:[%s6341_s11 + $0x54] sm:$0xf]  ;;  %v6036_v7 = vld [vmem:[%s6341_s11 + $0x58] sm:$0xff]  }
  0x2e   : >> { %v2575_v26 = vrot.slane %v6352_v11, 1  ;;  %v2659_v29 = vor.u32 %v2658_v16, %v2657_v15  ;;  %v528_v30 = vor.u32 %v526_v23, %v524_v6  ;;  %v2662_v35 = vshrl.u32 %v6031_v27, 16  ;;  %v6039_v9 = vld [vmem:[%s6334_s7 + $0x50] sm:$0xff]  }
  0x2f   : >> { %v525_v19 = vsel %vm407_vm1, %v520_v14, %v524_v6  ;;  %v2656_v28 = vor.u32 %v2655_v21, %v2652_v20  ;;  %v532_v31 = vrot.slane %v530_v24, 1  ;;  %v607_v32 = vrot.slane %v4848_v25, 1  ;;  %v6495_v14 = vld [vmem:[%s6341_s11 + $0x58] sm:$0xff]   ;;  %v6040_v15 = vld [vmem:[%s7058_s2 + $0xf0] sm:$0xff]  }
  0x30   : >> { %v2576_v34 = vsel %vm606_vm2, %v2573_v51, %v2575_v26  ;;  %v2665_v37 = vshll.u32 %v6031_v27, 16  ;;  %v2664_v46 = vrot.slane %v2662_v35, 1  ;;  %v4854_v48 = vcombine.low %v677_v44, %v6409_v56  ;;  %v5122_v24 = vld [vmem:[%s6334_s7 + $0x50] sm:$0xf] }
  0x31   : >> { %v2660_v39 = vsel %vm761_vm3, %v2656_v28, %v2659_v29  ;;  %v533_v11 = vsel %vm407_vm1, %v528_v30, %v532_v31  ;;  %v610_v50 = vrot.slane %v6390_v40, 1  ;;  %v763_v59 = vshrl.u32 %v4848_v25, 16  ;;  %v6042_v40 = vld [vmem:[%s7058_s2 + $0x30] sm:$0xff]   ;;  %v6519_v31 = vld [vmem:[%s6341_s11 + $0x60] ss:$0 sps:$4 sm:$0x11]  }
  0x32   : >> { %v2667_v47 = vrot.slane %v2665_v37, 2  ;;  %v684_v51 = vrot.slane %v4854_v48, 1  ;;  %v770_v1 = vrot.slane %v420_v45, 1  ;;  %v5116_v6 = vcombine.low %v5109_v60, %v6483_v61  ;;  %v5135_v60 = vld [vmem:[%s6341_s11 + $0x50] sm:$0xe] }
  0x33   : >> { %v765_v62 = vrot.slane %v763_v59, 1  ;;  %v2934_v18 = vshll.u32 %v6495_v14, 16  ;;  %v6053_v59 = vld [vmem:[%s7058_s2 + $0x100] sm:$0xff]  }
  0x34   : >> { %v2668_v49 = vor.u32 %v2667_v47, %v2664_v46  ;;  %v2927_v21 = vshrl.u32 %v5116_v6, 16 }
  0x35   : >> { %5622 = vmatmul.mubr.msk.bf16.vlgmr.msra.gmra.mrb[0].mxu0 %vm259_vm0, %v2499_v4  ;;  %v771_v4 = vrot.slane %v416_v43, 2  ;;  %v2936_v27 = vrot.slane %v2934_v18, 1 }
  0x36   : >> { %5626 = vmatpush3.bf16.msra.mxu0 %v6018_v33  ;;  %5627 = vmatprep.mubr.msk.bf16.mxu0 %vm259_vm0, %v2574_v8  ;;  %v608_v33 = vrot.slane %v6385_v38, 1  ;;  %v2669_v53 = vsel %vm761_vm3, %v2659_v29, %v2668_v49  ;;  %v687_v8 = vrot.slane %v6428_v13, 1  ;;  %v6048_v13 = vld [vmem:[%s7058_s2 + $0x38] sm:$0xff]   ;;  %v4890_v49 = vld [vmem:[%s6341_s11 + $0x14] sm:$0xf] }
  0x37   : >> { %5484 = vmatmul.mubr.msk.bf16.vlgmr.msra.gmra.mrb[0].mxu1 %vm259_vm0, %v427_v12  ;;  %5631 = vmatprep.subr.bf16.mxu0 %v6025_v5  ;;  %v772_v12 = vor.u32 %v771_v4, %v770_v1  ;;  %v6041_v29 = vld [vmem:[%s6334_s7 + $0x58] sm:$0xff]  }
  0x38   : >> { %5488 = vmatpush3.bf16.msra.mxu1 %v6026_v52  ;;  %5489 = vmatprep.mubr.msk.bf16.mxu1 %vm259_vm0, %v525_v19  ;;  %v609_v42 = vsel %vm606_vm2, %v607_v32, %v608_v33  ;;  %v685_v52 = vrot.slane %v6406_v54, 1  ;;  %v611_v58 = vsel %vm606_vm2, %v608_v33, %v610_v50  ;;  %v766_v54 = vshll.u32 %v4848_v25, 16  ;;  %v6512_v25 = vld [vmem:[%s6334_s7 + $0x54] sm:$0xf]  ;;  %v6522_v32 = vld [vmem:[%s6334_s7 + $0x58] sm:$0xff]  }
  0x39   : >> { %5493 = vmatprep.subr.bf16.mxu1 %v6032_v17  ;;  %v5129_v28 = vcombine.low %v5122_v24, %v6512_v25  ;;  %v6544_v50 = vld [vmem:[%s6341_s11 + $0x18] sm:$0xf]  ;;  %v3044_v4 = vshrl.u32 %v6522_v32, 16 }
  0x3a   : >> { %v686_v56 = vsel %vm606_vm2, %v684_v51, %v685_v52  ;;  %v768_v63 = vrot.slane %v766_v54, 2  ;;  %v688_v38 = vsel %vm606_vm2, %v685_v52, %v687_v8  ;;  %v6056_v54 = vld [vmem:[%s6334_s7 + $0x14] sm:$0xff]  }
  0x3b   : >> { %v3035_v35 = vshll.u32 %v5129_v28, 16  ;;  %v3033_v44 = vshrl.u32 %v5129_v28, 16 }
  0x3c   : >> { %v769_v10 = vor.u32 %v768_v63, %v765_v62  ;;  %v6060_v62 = vld [vmem:[%s7058_s2 + $0x48] sm:$0xff]   ;;  %v6564_v63 = vld [vmem:[%s6341_s11 + $0x1c] sm:$0xff]  }
  0x3d   : >> { %v3037_v46 = vrot.slane %v3035_v35, 1 }
  0x3e   : >> { %v773_v43 = vsel %vm761_vm3, %v769_v10, %v772_v12  ;;  %v4903_v10 = vld [vmem:[%s6334_s7 + $0x14] sm:$0xf] }
  0x3f   : >> { %v3038_v51 = vor.u32 %v3037_v46, %v3033_v44 }
  0x41   : >> { %5628 = vmatmul.mubr.msk.bf16.vlgmr.msra.gmra.mrb[0].mxu0 %vm259_vm0, %v2576_v34  ;;  %v6046_v34 = vld [vmem:[%s7058_s2 + $0xf8] sm:$0xff]  }
  0x42   : >> { %5632 = vmatpush3.bf16.msra.mxu0 %v6025_v5  ;;  %5633 = vmatprep.mubr.msk.bf16.mxu0 %vm259_vm0, %v2660_v39  ;;  %v6043_v5 = vld [vmem:[%s6341_s11 + $0x10] ss:$0 sps:$4 sm:$0x33]   ;;  %v6049_v39 = vld [vmem:[%s6341_s11 + $0x14] sm:$0xff]  }
  0x43   : >> { %5490 = vmatmul.mubr.msk.bf16.vlgmr.msra.gmra.mrb[0].mxu1 %vm259_vm0, %v533_v11  ;;  %5637 = vmatprep.subr.bf16.mxu0 %v6030_v36  ;;  %v775_v16 = vshrl.u32 %v6043_v5, 16  ;;  %v778_v45 = vshll.u32 %v6043_v5, 16  ;;  %v6055_v11 = vld [vmem:[%s7058_s2 + $0x40] sm:$0xff]   ;;  %v6570_v5 = vcombine.low %v5135_v60, %v6483_v61 }
  0x44   : >> { %5494 = vmatpush3.bf16.msra.mxu1 %v6032_v17  ;;  %5495 = vmatprep.mubr.msk.bf16.mxu1 %vm259_vm0, %v609_v42  ;;  %v2929_v17 = vshll.u32 %v5116_v6, 16  ;;  %v3040_v42 = vshll.u32 %v6522_v32, 16 }
  0x45   : >> { %5499 = vmatprep.subr.bf16.mxu1 %v6037_v41  ;;  %v777_v19 = vrot.slane %v775_v16, 1  ;;  %v780_v20 = vrot.slane %v778_v45, 2  ;;  %v3124_v61 = vrot.slane %v6570_v5, 1  ;;  %v3125_v16 = vrot.slane %v6495_v14, 1 }
  0x46   : >> { %v2931_v23 = vrot.slane %v2929_v17, 1  ;;  %v3042_v52 = vrot.slane %v3040_v42, 1 }
  0x47   : >> { %v781_v30 = vor.u32 %v780_v20, %v777_v19  ;;  %v3126_v19 = vsel %vm606_vm2, %v3124_v61, %v3125_v16  ;;  %v6059_v20 = vld [vmem:[%s7058_s2 + $0x108] sm:$0xff]  }
  0x48   : >> { %v2932_v26 = vor.u32 %v2931_v23, %v2927_v21  ;;  %v6590_v21 = vld [vmem:[%s6341_s11 + $0x24] ss:$0 sps:$4 sm:$0x11]   ;;  %v5142_v23 = vld [vmem:[%s6334_s7 + $0x50] sm:$0xe] }
  0x49   : >> { %v782_v37 = vsel %vm761_vm3, %v772_v12, %v781_v30  ;;  %v3046_v12 = vor.u32 %v3044_v4, %v3042_v52  ;;  %v1051_v30 = vshrl.u32 %v6564_v63, 16 }
  0x4a   : >> { %v2937_v33 = vsel %vm407_vm1, %v2932_v26, %v2936_v27  ;;  %v6066_v26 = vld [vmem:[%s7058_s2 + $0x50] sm:$0xff]  }
  0x4d   : >> { %5634 = vmatmul.mubr.msk.bf16.vlgmr.msra.gmra.mrb[0].mxu0 %vm259_vm0, %v2669_v53  ;;  %v6547_v53 = vld [vmem:[%s6334_s7 + $0x60] ss:$0 sps:$4 sm:$0x11]  }
  0x4e   : >> { %5638 = vmatpush3.bf16.msra.mxu0 %v6030_v36  ;;  %5639 = vmatprep.mubr.msk.bf16.mxu0 %vm259_vm0, %v6034_v55  ;;  %v2942_v36 = vshll.u32 %v6519_v31, 16  ;;  %v4897_v55 = vcombine.low %v4890_v49, %v6544_v50 }
  0x4f   : >> { %5496 = vmatmul.mubr.msk.bf16.vlgmr.msra.gmra.mrb[0].mxu1 %vm259_vm0, %v611_v58  ;;  %5643 = vmatprep.subr.bf16.mxu0 %v6035_v57  ;;  %v6050_v58 = vld [vmem:[%s6341_s11 + $0x1c] sm:$0xff]  }
  0x50   : >> { %5500 = vmatpush3.bf16.msra.mxu1 %v6037_v41  ;;  %5501 = vmatprep.mubr.msk.bf16.mxu1 %vm259_vm0, %v686_v56  ;;  %v2938_v41 = vshrl.u32 %v6495_v14, 16  ;;  %v2944_v47 = vrot.slane %v2942_v36, 1  ;;  %v3043_v56 = vsel %vm407_vm1, %v3038_v51, %v3042_v52  ;;  %v1042_v1 = vshll.u32 %v4897_v55, 16  ;;  %v6621_v52 = vld [vmem:[%s6334_s7 + $0x24] ss:$0 sps:$4 sm:$0x11]  }
  0x51   : >> { %5505 = vmatprep.subr.bf16.mxu1 %v6042_v40  ;;  %v3282_v51 = vshll.u32 %v6570_v5, 16  ;;  %v1161_v60 = vshll.u32 %v6621_v52, 16 }
  0x52   : >> { %v2940_v48 = vor.u32 %v2938_v41, %v2936_v27  ;;  %v1044_v8 = vrot.slane %v1042_v1, 1  ;;  %v6599_v27 = vld [vmem:[%s6334_s7 + $0x1c] sm:$0xff]  }
  0x53   : >> { %v6071_v1 = vld [vmem:[%s6341_s11 + $0x60] ss:$0 sps:$4 sm:$0x33]  }
  0x54   : >> { %v3294_v61 = vshll.u32 %v6071_v1, 16 }
  0x59   : >> { %5640 = vmatmul.mubr.msk.bf16.vlgmr.msra.gmra.mrb[0].mxu0 %vm259_vm0, %v6036_v7  ;;  %v1040_v7 = vshrl.u32 %v4897_v55, 16  ;;  %v3286_v55 = vrot.slane %v2938_v41, 1  ;;  %v3287_v41 = vrot.slane %v2934_v18, 2  ;;  %v1238_v18 = vrot.slane %v6564_v63, 1 }
  0x5a   : >> { %5644 = vmatpush3.bf16.msra.mxu0 %v6035_v57  ;;  %5645 = vmatprep.mubr.msk.bf16.mxu0 %vm259_vm0, %v6039_v9  ;;  %v2945_v57 = vsel %vm407_vm1, %v2940_v48, %v2944_v47  ;;  %v1047_v9 = vshll.u32 %v6564_v63, 16  ;;  %v3279_v47 = vshrl.u32 %v6570_v5, 16 }
  0x5b   : >> { %5502 = vmatmul.mubr.msk.bf16.vlgmr.msra.gmra.mrb[0].mxu1 %vm259_vm0, %v688_v38  ;;  %5649 = vmatprep.subr.bf16.mxu0 %v6040_v15  ;;  %v1045_v45 = vor.u32 %v1044_v8, %v1040_v7  ;;  %v1163_v8 = vrot.slane %v1161_v60, 1  ;;  %v5195_v60 = vld [vmem:[%s6334_s7 + $0x64] sm:$0xf] }
  0x5c   : >> { %5506 = vmatpush3.bf16.msra.mxu1 %v6042_v40  ;;  %5507 = vmatprep.mubr.msk.bf16.mxu1 %vm259_vm0, %v773_v43  ;;  %v3048_v40 = vshll.u32 %v6547_v53, 16  ;;  %v1049_v17 = vrot.slane %v1047_v9, 1 }
  0x5d   : >> { %5511 = vmatprep.subr.bf16.mxu1 %v6048_v13 }
  0x5e   : >> { %v3050_v6 = vrot.slane %v3048_v40, 1  ;;  %v1050_v24 = vsel %vm407_vm1, %v1045_v45, %v1049_v17  ;;  %v3284_v40 = vrot.slane %v3282_v51, 2  ;;  %v6079_v51 = vld [vmem:[%s6334_s7 + $0x64] sm:$0xff]  }
  0x60   : >> { %v3051_v43 = vsel %vm407_vm1, %v3046_v12, %v3050_v6  ;;  %v3288_v6 = vor.u32 %v3287_v41, %v3286_v55  ;;  %v3291_v12 = vshrl.u32 %v6071_v1, 16  ;;  %v6691_v55 = vld [vmem:[%s6341_s11 + $0x6c] sm:$0xff]  }
  0x65   : >> { %5646 = vmatmul.mubr.msk.bf16.vlgmr.msra.gmra.mrb[0].mxu0 %vm259_vm0, %v6041_v29  ;;  %v5145_v29 = vcombine.low %v5142_v23, %v6512_v25  ;;  %v1053_v25 = vor.u32 %v1051_v30, %v1049_v17  ;;  %v6077_v17 = vld [vmem:[%s7058_s2 + $0x60] sm:$0xff]   ;;  %v1240_v23 = vrot.slane %v6590_v21, 1 }
  0x66   : >> { %5650 = vmatpush3.bf16.msra.mxu0 %v6040_v15  ;;  %5651 = vmatprep.mubr.msk.bf16.mxu0 %vm259_vm0, %v2937_v33  ;;  %v6576_v15 = vld [vmem:[%s6334_s7 + $0x18] sm:$0xf]  ;;  %v1055_v33 = vshll.u32 %v6590_v21, 16  ;;  %v6082_v21 = vld [vmem:[%s7058_s2 + $0x68] sm:$0xff]  }
  0x67   : >> { %5508 = vmatmul.mubr.msk.bf16.vlgmr.msra.gmra.mrb[0].mxu1 %vm259_vm0, %v782_v37  ;;  %5655 = vmatprep.subr.bf16.mxu0 %v6046_v34  ;;  %v4910_v38 = vcombine.low %v4903_v10, %v6576_v15  ;;  %v1153_v37 = vshll.u32 %v6599_v27, 16  ;;  %v3201_v36 = vrot.slane %v5145_v29, 1  ;;  %v6074_v29 = vld [vmem:[%s6341_s11 + $0x64] sm:$0xff]  }
  0x68   : >> { %5512 = vmatpush3.bf16.msra.mxu1 %v6048_v13  ;;  %5513 = vmatprep.mubr.msk.bf16.mxu1 %vm259_vm0, %v6049_v39  ;;  %v6057_v13 = vld [vmem:[%s6334_s7 + $0x1c] sm:$0xff]   ;;  %v3127_v39 = vrot.slane %v6519_v31, 1  ;;  %v1057_v42 = vrot.slane %v1055_v33, 1  ;;  %v6065_v31 = vld [vmem:[%s7058_s2 + $0x110] sm:$0xff]  }
  0x69   : >> { %5517 = vmatprep.subr.bf16.mxu1 %v6055_v11  ;;  %v1148_v28 = vshll.u32 %v4910_v38, 16  ;;  %v1155_v46 = vrot.slane %v1153_v37, 1  ;;  %v6075_v33 = vld [vmem:[%s7058_s2 + $0x120] sm:$0xff]  }
  0x6a   : >> { %v3128_v48 = vsel %vm606_vm2, %v3125_v16, %v3127_v39  ;;  %v5182_v37 = vld [vmem:[%s6341_s11 + $0x64] sm:$0xf]  ;;  %v6676_v39 = vld [vmem:[%s6341_s11 + $0x68] sm:$0xf] }
  0x6b   : >> { %v1150_v35 = vrot.slane %v1148_v28, 1 }
  0x71   : >> { %5652 = vmatmul.mubr.msk.bf16.vlgmr.msra.gmra.mrb[0].mxu0 %vm259_vm0, %v2945_v57 }
  0x72   : >> { %5656 = vmatpush3.bf16.msra.mxu0 %v6046_v34  ;;  %5657 = vmatprep.mubr.msk.bf16.mxu0 %vm259_vm0, %v3043_v56  ;;  %v1146_v34 = vshrl.u32 %v4910_v38, 16  ;;  %v4916_v56 = vld [vmem:[%s6341_s11 + $0x14] sm:$0xe]  ;;  %v3293_v38 = vrot.slane %v3291_v12, 1 }
  0x73   : >> { %5514 = vmatmul.mubr.msk.bf16.vlgmr.msra.gmra.mrb[0].mxu1 %vm259_vm0, %v6050_v58  ;;  %5661 = vmatprep.subr.bf16.mxu0 %v6053_v59  ;;  %v3281_v58 = vrot.slane %v3279_v47, 1  ;;  %v4919_v4 = vcombine.low %v4916_v56, %v6544_v50  ;;  %v6083_v47 = vld [vmem:[%s6341_s11 + $0x24] ss:$0 sps:$4 sm:$0x33]  }
  0x74   : >> { %5518 = vmatpush3.bf16.msra.mxu1 %v6055_v11  ;;  %5519 = vmatprep.mubr.msk.bf16.mxu1 %vm259_vm0, %v6056_v54  ;;  %v3202_v11 = vrot.slane %v6522_v32, 1  ;;  %v1151_v44 = vor.u32 %v1150_v35, %v1146_v34  ;;  %v1058_v32 = vsel %vm407_vm1, %v1053_v25, %v1057_v42  ;;  %v1157_v54 = vshrl.u32 %v6599_v27, 16 }
  0x75   : >> { %5523 = vmatprep.subr.bf16.mxu1 %v6060_v62  ;;  %v3285_v5 = vor.u32 %v3284_v40, %v3281_v58  ;;  %v1237_v14 = vrot.slane %v4919_v4, 1  ;;  %v1241_v34 = vsel %vm606_vm2, %v1238_v18, %v1240_v23  ;;  %v1392_v35 = vshrl.u32 %v4919_v4, 16  ;;  %v6088_v58 = vld [vmem:[%s7058_s2 + $0x70] sm:$0xff]   ;;  %v6737_v23 = vld [vmem:[%s6341_s11 + $0x2c] sm:$0xf] }
  0x76   : >> { %v3203_v49 = vsel %vm606_vm2, %v3201_v36, %v3202_v11  ;;  %v1156_v57 = vsel %vm407_vm1, %v1151_v44, %v1155_v46  ;;  %v1159_v7 = vor.u32 %v1157_v54, %v1155_v46  ;;  %v1399_v25 = vrot.slane %v1051_v30, 1 }
  0x77   : >> { %v3289_v16 = vsel %vm761_vm3, %v3285_v5, %v3288_v6  ;;  %v1239_v45 = vsel %vm606_vm2, %v1237_v14, %v1238_v18  ;;  %v1394_v36 = vrot.slane %v1392_v35, 1  ;;  %v1400_v42 = vrot.slane %v1047_v9, 2  ;;  %v6086_v18 = vld [vmem:[%s7058_s2 + $0x130] sm:$0xff]  }
  0x78   : >> { %v1164_v50 = vsel %vm407_vm1, %v1159_v7, %v1163_v8  ;;  %v5189_v44 = vcombine.low %v5182_v37, %v6676_v39  ;;  %v1317_v46 = vrot.slane %v6621_v52, 1  ;;  %v1404_v63 = vshrl.u32 %v6083_v47, 16  ;;  %v6081_v7 = vld [vmem:[%s6334_s7 + $0x6c] sm:$0xff]   ;;  %v6712_v8 = vld [vmem:[%s6341_s11 + $0x74] ss:$0 sps:$4 sm:$0x11]  }
  0x79   : >> { %v1407_v9 = vshll.u32 %v6083_v47, 16  ;;  %v3563_v40 = vshll.u32 %v6691_v55, 16  ;;  %v6100_v37 = vld [vmem:[%s7058_s2 + $0x80] sm:$0xff]  }
  0x7a   : >> { %v1406_v41 = vrot.slane %v1404_v63, 1 }
  0x7b   : >> { %v1409_v54 = vrot.slane %v1407_v9, 2 }
  0x7d   : >> { %5658 = vmatmul.mubr.msk.bf16.vlgmr.msra.gmra.mrb[0].mxu0 %vm259_vm0, %v3051_v43  ;;  %v3296_v43 = vrot.slane %v3294_v61, 2 }
  0x7e   : >> { %5662 = vmatpush3.bf16.msra.mxu0 %v6053_v59  ;;  %5663 = vmatprep.mubr.msk.bf16.mxu0 %vm259_vm0, %v3126_v19  ;;  %v6072_v59 = vld [vmem:[%s7058_s2 + $0x58] sm:$0xff]  }
  0x7f   : >> { %5520 = vmatmul.mubr.msk.bf16.vlgmr.msra.gmra.mrb[0].mxu1 %vm259_vm0, %v6057_v13  ;;  %5667 = vmatprep.subr.bf16.mxu0 %v6059_v20  ;;  %v4923_v13 = vld [vmem:[%s6334_s7 + $0x14] sm:$0xe] }
  0x80   : >> { %5524 = vmatpush3.bf16.msra.mxu1 %v6060_v62  ;;  %5525 = vmatprep.mubr.msk.bf16.mxu1 %vm259_vm0, %v1050_v24  ;;  %v3204_v62 = vrot.slane %v6547_v53, 1  ;;  %v6070_v53 = vld [vmem:[%s7058_s2 + $0x118] sm:$0xff]   ;;  %v4926_v19 = vcombine.low %v4923_v13, %v6576_v15 }
  0x81   : >> { %5529 = vmatprep.subr.bf16.mxu1 %v6066_v26 }
  0x82   : >> { %v3205_v10 = vsel %vm606_vm2, %v3202_v11, %v3204_v62  ;;  %v1314_v24 = vrot.slane %v4926_v19, 1  ;;  %v6705_v62 = vld [vmem:[%s6334_s7 + $0x68] sm:$0xf] }
  0x83   : >> { %v5202_v5 = vcombine.low %v5195_v60, %v6705_v62 }
  0x85   : >> { %v3664_v12 = vshll.u32 %v5202_v5, 16 }
  0x89   : >> { %5664 = vmatmul.mubr.msk.bf16.vlgmr.msra.gmra.mrb[0].mxu0 %vm259_vm0, %v3128_v48  ;;  %v6076_v48 = vld [vmem:[%s6341_s11 + $0x6c] sm:$0xff]  }
  0x8a   : >> { %5668 = vmatpush3.bf16.msra.mxu0 %v6059_v20  ;;  %5669 = vmatprep.mubr.msk.bf16.mxu0 %vm259_vm0, %v3203_v49  ;;  %v3297_v20 = vor.u32 %v3296_v43, %v3293_v38  ;;  %v3666_v38 = vrot.slane %v3664_v12, 1 }
  0x8b   : >> { %5526 = vmatmul.mubr.msk.bf16.vlgmr.msra.gmra.mrb[0].mxu1 %vm259_vm0, %v1058_v32  ;;  %5673 = vmatprep.subr.bf16.mxu0 %v6065_v31  ;;  %v6080_v32 = vld [vmem:[%s7058_s2 + $0x128] sm:$0xff]  }
  0x8c   : >> { %5530 = vmatpush3.bf16.msra.mxu1 %v6066_v26  ;;  %5531 = vmatprep.mubr.msk.bf16.mxu1 %vm259_vm0, %v1156_v57  ;;  %v1315_v26 = vrot.slane %v6599_v27, 1  ;;  %v3298_v28 = vsel %vm761_vm3, %v3288_v6, %v3297_v20  ;;  %v1395_v27 = vshll.u32 %v4919_v4, 16  ;;  %v3558_v57 = vshll.u32 %v5189_v44, 16  ;;  %v4963_v20 = vld [vmem:[%s6341_s11 + $0x28] sm:$0xf] }
  0x8d   : >> { %5535 = vmatprep.subr.bf16.mxu1 %v6072_v59  ;;  %v3565_v4 = vrot.slane %v3563_v40, 1  ;;  %v1410_v6 = vor.u32 %v1409_v54, %v1406_v41  ;;  %v6783_v41 = vld [vmem:[%s6341_s11 + $0x38] ss:$0 sps:$4 sm:$0x11]   ;;  %v5215_v54 = vld [vmem:[%s6334_s7 + $0x64] sm:$0xe] }
  0x8e   : >> { %v1316_v15 = vsel %vm606_vm2, %v1314_v24, %v1315_v26  ;;  %v1397_v11 = vrot.slane %v1395_v27, 2  ;;  %v1318_v30 = vsel %vm606_vm2, %v1315_v26, %v1317_v46  ;;  %v3560_v56 = vrot.slane %v3558_v57, 1  ;;  %v5208_v27 = vld [vmem:[%s6341_s11 + $0x64] sm:$0xe] }
  0x8f   : >> { %v3754_v57 = vrot.slane %v6691_v55, 1 }
  0x90   : >> { %v1398_v49 = vor.u32 %v1397_v11, %v1394_v36  ;;  %v6756_v36 = vld [vmem:[%s6341_s11 + $0x30] sm:$0xff]  }
  0x95   : >> { %5670 = vmatmul.mubr.msk.bf16.vlgmr.msra.gmra.mrb[0].mxu0 %vm259_vm0, %v3205_v10  ;;  %v6719_v10 = vld [vmem:[%s6334_s7 + $0x6c] sm:$0xff]  }
  0x96   : >> { %5674 = vmatpush3.bf16.msra.mxu0 %v6065_v31  ;;  %5675 = vmatprep.mubr.msk.bf16.mxu0 %vm259_vm0, %v3289_v16  ;;  %v1401_v31 = vor.u32 %v1400_v42, %v1399_v25  ;;  %v6089_v16 = vld [vmem:[%s6341_s11 + $0x28] sm:$0xff]   ;;  %v3669_v43 = vshll.u32 %v6719_v10, 16  ;;  %v3673_v25 = vshrl.u32 %v6719_v10, 16 }
  0x97   : >> { %5532 = vmatmul.mubr.msk.bf16.vlgmr.msra.gmra.mrb[0].mxu1 %vm259_vm0, %v1164_v50  ;;  %5679 = vmatprep.subr.bf16.mxu0 %v6070_v53  ;;  %v3567_v50 = vshrl.u32 %v6691_v55, 16 }
  0x98   : >> { %5536 = vmatpush3.bf16.msra.mxu1 %v6072_v59  ;;  %5537 = vmatprep.mubr.msk.bf16.mxu1 %vm259_vm0, %v1239_v45  ;;  %v1402_v52 = vsel %vm761_vm3, %v1398_v49, %v1401_v31  ;;  %v3556_v59 = vshrl.u32 %v5189_v44, 16  ;;  %v1411_v61 = vsel %vm761_vm3, %v1401_v31, %v1410_v6  ;;  %v3571_v45 = vshll.u32 %v6712_v8, 16 }
  0x99   : >> { %5541 = vmatprep.subr.bf16.mxu1 %v6077_v17  ;;  %v3569_v13 = vor.u32 %v3567_v50, %v3565_v4  ;;  %v3671_v26 = vrot.slane %v3669_v43, 1  ;;  %v6763_v44 = vcombine.low %v5208_v27, %v6676_v39  ;;  %v5218_v6 = vcombine.low %v5215_v54, %v6705_v62 }
  0x9a   : >> { %v3561_v1 = vor.u32 %v3560_v56, %v3556_v59  ;;  %v3573_v19 = vrot.slane %v3571_v45, 1  ;;  %v6099_v56 = vld [vmem:[%s7058_s2 + $0x140] sm:$0xff]   ;;  %v3831_v45 = vrot.slane %v6719_v10, 1  ;;  %v3916_v27 = vrot.slane %v3563_v40, 2 }
  0x9b   : >> { %v3675_v49 = vor.u32 %v3673_v25, %v3671_v26  ;;  %v3753_v39 = vrot.slane %v6763_v44, 1  ;;  %v1867_v40 = vrot.slane %v6756_v36, 1  ;;  %v1869_v54 = vrot.slane %v6783_v41, 1 }
  0x9c   : >> { %v3566_v14 = vsel %vm407_vm1, %v3561_v1, %v3565_v4  ;;  %v6106_v1 = vld [vmem:[%s7058_s2 + $0x88] sm:$0xff]   ;;  %v6792_v4 = vld [vmem:[%s6334_s7 + $0x30] sm:$0xff]  }
  0x9d   : >> { %v3755_v59 = vsel %vm606_vm2, %v3753_v39, %v3754_v57 }
  0xa1   : >> { %5676 = vmatmul.mubr.msk.bf16.vlgmr.msra.gmra.mrb[0].mxu0 %vm259_vm0, %v3298_v28  ;;  %v4970_v28 = vcombine.low %v4963_v20, %v6737_v23  ;;  %v6105_v20 = vld [vmem:[%s7058_s2 + $0x148] sm:$0xff]  }
  0xa2   : >> { %5680 = vmatpush3.bf16.msra.mxu0 %v6070_v53  ;;  %5681 = vmatprep.mubr.msk.bf16.mxu0 %vm259_vm0, %v6074_v29  ;;  %v6095_v53 = vld [vmem:[%s7058_s2 + $0x78] sm:$0xff]   ;;  %v3574_v29 = vsel %vm407_vm1, %v3569_v13, %v3573_v19 }
  0xa3   : >> { %5538 = vmatmul.mubr.msk.bf16.vlgmr.msra.gmra.mrb[0].mxu1 %vm259_vm0, %v1241_v34  ;;  %5685 = vmatprep.subr.bf16.mxu0 %v6075_v33  ;;  %v6090_v34 = vld [vmem:[%s6341_s11 + $0x30] sm:$0xff]   ;;  %v1671_v11 = vshll.u32 %v4970_v28, 16  ;;  %v1669_v46 = vshrl.u32 %v4970_v28, 16 }
  0xa4   : >> { %5542 = vmatpush3.bf16.msra.mxu1 %v6077_v17  ;;  %5543 = vmatprep.mubr.msk.bf16.mxu1 %vm259_vm0, %v1316_v15  ;;  %v3662_v17 = vshrl.u32 %v5202_v5, 16  ;;  %v6093_v15 = vld [vmem:[%s7058_s2 + $0x138] sm:$0xff]  }
  0xa5   : >> { %5547 = vmatprep.subr.bf16.mxu1 %v6082_v21  ;;  %v1673_v47 = vrot.slane %v1671_v11, 1 }
  0xa6   : >> { %v3667_v24 = vor.u32 %v3666_v38, %v3662_v17 }
  0xa8   : >> { %v3672_v35 = vsel %vm407_vm1, %v3667_v24, %v3671_v26  ;;  %v3911_v24 = vshll.u32 %v6763_v44, 16  ;;  %v6814_v26 = vld [vmem:[%s6334_s7 + $0x38] ss:$0 sps:$4 sm:$0x11]  }
  0xa9   : >> { %v1790_v11 = vshll.u32 %v6814_v26, 16 }
  0xad   : >> { %5682 = vmatmul.mubr.msk.bf16.vlgmr.msra.gmra.mrb[0].mxu0 %vm259_vm0, %v6076_v48  ;;  %v1676_v48 = vshll.u32 %v6756_v36, 16 }
  0xae   : >> { %5686 = vmatpush3.bf16.msra.mxu0 %v6075_v33  ;;  %5687 = vmatprep.mubr.msk.bf16.mxu0 %vm259_vm0, %v6079_v51  ;;  %v6742_v33 = vld [vmem:[%s6334_s7 + $0x74] ss:$0 sps:$4 sm:$0x11]   ;;  %v4976_v51 = vld [vmem:[%s6334_s7 + $0x28] sm:$0xf] }
  0xaf   : >> { %5544 = vmatmul.mubr.msk.bf16.vlgmr.msra.gmra.mrb[0].mxu1 %vm259_vm0, %v1318_v30  ;;  %5691 = vmatprep.subr.bf16.mxu0 %v6080_v32  ;;  %v3677_v42 = vshll.u32 %v6742_v33, 16  ;;  %v1674_v30 = vor.u32 %v1673_v47, %v1669_v46  ;;  %v1678_v63 = vrot.slane %v1676_v48, 1 }
  0xb0   : >> { %5548 = vmatpush3.bf16.msra.mxu1 %v6082_v21  ;;  %5549 = vmatprep.mubr.msk.bf16.mxu1 %vm259_vm0, %v1402_v52  ;;  %v6096_v21 = vld [vmem:[%s6334_s7 + $0x28] sm:$0xff]  }
  0xb1   : >> { %5553 = vmatprep.subr.bf16.mxu1 %v6088_v58  ;;  %v3679_v31 = vrot.slane %v3677_v42, 1  ;;  %v1679_v60 = vsel %vm407_vm1, %v1674_v30, %v1678_v63  ;;  %v3833_v42 = vrot.slane %v6742_v33, 1 }
  0xb3   : >> { %v3680_v52 = vsel %vm407_vm1, %v3675_v49, %v3679_v31  ;;  %v3834_v31 = vsel %vm606_vm2, %v3831_v45, %v3833_v42 }
  0xb9   : >> { %5688 = vmatmul.mubr.msk.bf16.vlgmr.msra.gmra.mrb[0].mxu0 %vm259_vm0, %v6081_v7  ;;  %v1680_v7 = vshrl.u32 %v6756_v36, 16 }
  0xba   : >> { %5692 = vmatpush3.bf16.msra.mxu0 %v6080_v32  ;;  %5693 = vmatprep.mubr.msk.bf16.mxu0 %vm259_vm0, %v3566_v14  ;;  %v6769_v32 = vld [vmem:[%s6334_s7 + $0x2c] sm:$0xf]  ;;  %v1684_v14 = vshll.u32 %v6783_v41, 16  ;;  %v6122_v41 = vld [vmem:[%s7058_s2 + $0xa0] sm:$0xff]  }
  0xbb   : >> { %5550 = vmatmul.mubr.msk.bf16.vlgmr.msra.gmra.mrb[0].mxu1 %vm259_vm0, %v1411_v61  ;;  %5697 = vmatprep.subr.bf16.mxu0 %v6086_v18  ;;  %v4983_v9 = vcombine.low %v4976_v51, %v6769_v32  ;;  %v1782_v61 = vshll.u32 %v6792_v4, 16  ;;  %v1682_v62 = vor.u32 %v1680_v7, %v1678_v63  ;;  %v6117_v63 = vld [vmem:[%s7058_s2 + $0x98] sm:$0xff]  }
  0xbc   : >> { %5554 = vmatpush3.bf16.msra.mxu1 %v6088_v58  ;;  %5555 = vmatprep.mubr.msk.bf16.mxu1 %vm259_vm0, %v6089_v16  ;;  %v6097_v58 = vld [vmem:[%s6334_s7 + $0x30] sm:$0xff]   ;;  %v3756_v16 = vrot.slane %v6712_v8, 1  ;;  %v1686_v17 = vrot.slane %v1684_v14, 1  ;;  %v3908_v8 = vshrl.u32 %v6763_v44, 16  ;;  %v6115_v14 = vld [vmem:[%s7058_s2 + $0x158] sm:$0xff]  }
  0xbd   : >> { %5559 = vmatprep.subr.bf16.mxu1 %v6095_v53  ;;  %v1777_v5 = vshll.u32 %v4983_v9, 16  ;;  %v1784_v43 = vrot.slane %v1782_v61, 1  ;;  %v6111_v44 = vld [vmem:[%s6341_s11 + $0x74] ss:$0 sps:$4 sm:$0x33]  }
  0xbe   : >> { %v3757_v13 = vsel %vm606_vm2, %v3754_v57, %v3756_v16  ;;  %v1687_v10 = vsel %vm407_vm1, %v1682_v62, %v1686_v17  ;;  %v3920_v51 = vshrl.u32 %v6111_v44, 16  ;;  %v3923_v39 = vshll.u32 %v6111_v44, 16  ;;  %v5255_v61 = vld [vmem:[%s6341_s11 + $0x78] sm:$0xf]  ;;  %v6869_v16 = vld [vmem:[%s6341_s11 + $0x7c] sm:$0xf] }
  0xbf   : >> { %v1779_v12 = vrot.slane %v1777_v5, 1  ;;  %v2028_v62 = vrot.slane %v1680_v7, 1  ;;  %v2029_v17 = vrot.slane %v1676_v48, 2 }
  0xc5   : >> { %5694 = vmatmul.mubr.msk.bf16.vlgmr.msra.gmra.mrb[0].mxu0 %vm259_vm0, %v3574_v29  ;;  %v6112_v29 = vld [vmem:[%s7058_s2 + $0x90] sm:$0xff]  }
  0xc6   : >> { %5698 = vmatpush3.bf16.msra.mxu0 %v6086_v18  ;;  %5699 = vmatprep.mubr.msk.bf16.mxu0 %vm259_vm0, %v3672_v35  ;;  %v1775_v18 = vshrl.u32 %v4983_v9, 16  ;;  %v3910_v35 = vrot.slane %v3908_v8, 1  ;;  %v3922_v9 = vrot.slane %v3920_v51, 1  ;;  %v2030_v8 = vor.u32 %v2029_v17, %v2028_v62 }
  0xc7   : >> { %5556 = vmatmul.mubr.msk.bf16.vlgmr.msra.gmra.mrb[0].mxu1 %vm259_vm0, %v6090_v34  ;;  %5703 = vmatprep.subr.bf16.mxu0 %v6093_v15  ;;  %v4989_v34 = vld [vmem:[%s6341_s11 + $0x28] sm:$0xe] }
  0xc8   : >> { %5560 = vmatpush3.bf16.msra.mxu1 %v6095_v53  ;;  %5561 = vmatprep.mubr.msk.bf16.mxu1 %vm259_vm0, %v6096_v21  ;;  %v3830_v53 = vrot.slane %v5218_v6, 1  ;;  %v1780_v38 = vor.u32 %v1779_v12, %v1775_v18  ;;  %v3915_v21 = vrot.slane %v3567_v50, 1  ;;  %v4992_v25 = vcombine.low %v4989_v34, %v6737_v23  ;;  %v6110_v23 = vld [vmem:[%s7058_s2 + $0x150] sm:$0xff]   ;;  %v6114_v6 = vld [vmem:[%s6341_s11 + $0x78] sm:$0xff]   ;;  %v6128_v34 = vld [vmem:[%s7058_s2 + $0xa8] sm:$0xff]  }
  0xc9   : >> { %5565 = vmatprep.subr.bf16.mxu1 %v6100_v37  ;;  %v1792_v50 = vrot.slane %v1790_v11, 1  ;;  %v1870_v18 = vsel %vm606_vm2, %v1867_v40, %v1869_v54  ;;  %v5268_v11 = vld [vmem:[%s6334_s7 + $0x78] sm:$0xf] }
  0xca   : >> { %v3832_v19 = vsel %vm606_vm2, %v3830_v53, %v3831_v45  ;;  %v1785_v28 = vsel %vm407_vm1, %v1780_v38, %v1784_v43  ;;  %v3917_v47 = vor.u32 %v3916_v27, %v3915_v21  ;;  %v1866_v55 = vrot.slane %v4992_v25, 1 }
  0xcb   : >> { %v2024_v12 = vshll.u32 %v4992_v25, 16  ;;  %v5262_v38 = vcombine.low %v5255_v61, %v6869_v16  ;;  %v6140_v61 = vld [vmem:[%s7058_s2 + $0xb8] sm:$0xff]  }
  0xcc   : >> { %v1868_v30 = vsel %vm606_vm2, %v1866_v55, %v1867_v40  ;;  %v6126_v40 = vld [vmem:[%s7058_s2 + $0x168] sm:$0xff]  }
  0xcd   : >> { %v2026_v45 = vrot.slane %v2024_v12, 2  ;;  %v5281_v12 = vld [vmem:[%s6341_s11 + $0x78] sm:$0xe] }
  0xce   : >> { %v5284_v17 = vcombine.low %v5281_v12, %v6869_v16  ;;  %v6137_v16 = vld [vmem:[%s6334_s7 + $0x44] sm:$0xff]  }
  0xd1   : >> { %5700 = vmatmul.mubr.msk.bf16.vlgmr.msra.gmra.mrb[0].mxu0 %vm259_vm0, %v3680_v52  ;;  %v3925_v52 = vrot.slane %v3923_v39, 2 }
  0xd2   : >> { %5704 = vmatpush3.bf16.msra.mxu0 %v6093_v15  ;;  %5705 = vmatprep.mubr.msk.bf16.mxu0 %vm259_vm0, %v3755_v59  ;;  %v3913_v15 = vrot.slane %v3911_v24, 2  ;;  %v6119_v24 = vld [vmem:[%s6334_s7 + $0x78] sm:$0xff]  }
  0xd3   : >> { %5562 = vmatmul.mubr.msk.bf16.vlgmr.msra.gmra.mrb[0].mxu1 %vm259_vm0, %v6097_v58  ;;  %5709 = vmatprep.subr.bf16.mxu0 %v6099_v56  ;;  %v4996_v58 = vld [vmem:[%s6334_s7 + $0x28] sm:$0xe] }
  0xd4   : >> { %5566 = vmatpush3.bf16.msra.mxu1 %v6100_v37  ;;  %5567 = vmatprep.mubr.msk.bf16.mxu1 %vm259_vm0, %v1679_v60  ;;  %v1786_v37 = vshrl.u32 %v6792_v4, 16  ;;  %v3914_v46 = vor.u32 %v3913_v15, %v3910_v35  ;;  %v4999_v59 = vcombine.low %v4996_v58, %v6769_v32  ;;  %v4185_v35 = vshrl.u32 %v5262_v38, 16 }
  0xd5   : >> { %5571 = vmatprep.subr.bf16.mxu1 %v6106_v1 }
  0xd6   : >> { %v1788_v49 = vor.u32 %v1786_v37, %v1784_v43  ;;  %v3918_v57 = vsel %vm761_vm3, %v3914_v46, %v3917_v47  ;;  %v1943_v60 = vrot.slane %v4999_v59, 1  ;;  %v1946_v43 = vrot.slane %v6814_v26, 1 }
  0xd8   : >> { %v1793_v33 = vsel %vm407_vm1, %v1788_v49, %v1792_v50  ;;  %v6121_v49 = vld [vmem:[%s6334_s7 + $0x80] sm:$0xff]   ;;  %v6905_v50 = vld [vmem:[%s6341_s11 + $0x88] ss:$0 sps:$4 sm:$0x11]  }
  0xdd   : >> { %5706 = vmatmul.mubr.msk.bf16.vlgmr.msra.gmra.mrb[0].mxu0 %vm259_vm0, %v3757_v13  ;;  %v6123_v13 = vld [vmem:[%s6341_s11 + $0x38] ss:$0 sps:$4 sm:$0x33]  }
  0xde   : >> { %5710 = vmatpush3.bf16.msra.mxu0 %v6099_v56  ;;  %5711 = vmatprep.mubr.msk.bf16.mxu0 %vm259_vm0, %v3832_v19  ;;  %v3926_v56 = vor.u32 %v3925_v52, %v3922_v9  ;;  %v6116_v19 = vld [vmem:[%s6341_s11 + $0x80] sm:$0xff]   ;;  %v2033_v36 = vshrl.u32 %v6123_v13, 16  ;;  %v2036_v48 = vshll.u32 %v6123_v13, 16 }
  0xdf   : >> { %5568 = vmatmul.mubr.msk.bf16.vlgmr.msra.gmra.mrb[0].mxu1 %vm259_vm0, %v1687_v10  ;;  %5715 = vmatprep.subr.bf16.mxu0 %v6105_v20  ;;  %v6120_v10 = vld [vmem:[%s7058_s2 + $0x160] sm:$0xff]  }
  0xe0   : >> { %5572 = vmatpush3.bf16.msra.mxu1 %v6106_v1  ;;  %5573 = vmatprep.mubr.msk.bf16.mxu1 %vm259_vm0, %v1785_v28  ;;  %v1944_v1 = vrot.slane %v6792_v4, 1  ;;  %v3927_v5 = vsel %vm761_vm3, %v3917_v47, %v3926_v56  ;;  %v2021_v4 = vshrl.u32 %v4992_v25, 16  ;;  %v6884_v28 = vld [vmem:[%s6341_s11 + $0x80] sm:$0xff]   ;;  %v2035_v27 = vrot.slane %v2033_v36, 1  ;;  %v6898_v25 = vld [vmem:[%s6334_s7 + $0x7c] sm:$0xf] }
  0xe1   : >> { %5577 = vmatprep.subr.bf16.mxu1 %v6112_v29  ;;  %v4192_v21 = vshll.u32 %v6884_v28, 16  ;;  %v2038_v37 = vrot.slane %v2036_v48, 2  ;;  %v5275_v46 = vcombine.low %v5268_v11, %v6898_v25  ;;  %v5036_v56 = vld [vmem:[%s6341_s11 + $0x3c] sm:$0xf]  ;;  %v5288_v48 = vld [vmem:[%s6334_s7 + $0x78] sm:$0xe] }
  0xe2   : >> { %v1945_v32 = vsel %vm606_vm2, %v1943_v60, %v1944_v1  ;;  %v2023_v53 = vrot.slane %v2021_v4, 1  ;;  %v1947_v7 = vsel %vm606_vm2, %v1944_v1, %v1946_v43  ;;  %v6145_v1 = vld [vmem:[%s6341_s11 + $0x40] sm:$0xf]  ;;  %v6139_v36 = vld [vmem:[%s7058_s2 + $0x178] sm:$0xff]  }
  0xe3   : >> { %v4194_v44 = vrot.slane %v4192_v21, 1  ;;  %v2039_v47 = vor.u32 %v2038_v37, %v2035_v27  ;;  %v4293_v51 = vshll.u32 %v5275_v46, 16  ;;  %v6136_v4 = vld [vmem:[%s6334_s7 + $0x3c] sm:$0xff]  }
  0xe5   : >> { %v2040_v39 = vsel %vm761_vm3, %v2030_v8, %v2039_v47  ;;  %v4295_v9 = vrot.slane %v4293_v51, 1  ;;  %v4537_v47 = vshrl.u32 %v5284_v17, 16  ;;  %v6144_v51 = vld [vmem:[%s6341_s11 + $0x88] ss:$0 sps:$4 sm:$0x33]  }
  0xe7   : >> { %v4539_v22 = vrot.slane %v4537_v47, 1 }
  0xe9   : >> { %5712 = vmatmul.mubr.msk.bf16.vlgmr.msra.gmra.mrb[0].mxu0 %vm259_vm0, %v3834_v31  ;;  %v6912_v31 = vld [vmem:[%s6334_s7 + $0x80] sm:$0xff]  }
  0xea   : >> { %5716 = vmatpush3.bf16.msra.mxu0 %v6105_v20  ;;  %5717 = vmatprep.mubr.msk.bf16.mxu0 %vm259_vm0, %v3918_v57  ;;  %v2027_v20 = vor.u32 %v2026_v45, %v2023_v53  ;;  %v6129_v57 = vld [vmem:[%s6341_s11 + $0x3c] sm:$0xff]   ;;  %v4298_v52 = vshll.u32 %v6912_v31, 16  ;;  %v4302_v45 = vshrl.u32 %v6912_v31, 16  ;;  %v4460_v37 = vrot.slane %v6912_v31, 1 }
  0xeb   : >> { %5574 = vmatmul.mubr.msk.bf16.vlgmr.msra.gmra.mrb[0].mxu1 %vm259_vm0, %v1793_v33  ;;  %5721 = vmatprep.subr.bf16.mxu0 %v6110_v23  ;;  %v4196_v33 = vshrl.u32 %v6884_v28, 16 }
  0xec   : >> { %5578 = vmatpush3.bf16.msra.mxu1 %v6112_v29  ;;  %5579 = vmatprep.mubr.msk.bf16.mxu1 %vm259_vm0, %v1868_v30  ;;  %v4187_v29 = vshll.u32 %v5262_v38, 16  ;;  %v2031_v26 = vsel %vm761_vm3, %v2027_v20, %v2030_v8  ;;  %v4200_v30 = vshll.u32 %v6905_v50, 16  ;;  %v4300_v60 = vrot.slane %v4298_v52, 1 }
  0xed   : >> { %5583 = vmatprep.subr.bf16.mxu1 %v6117_v63  ;;  %v4198_v58 = vor.u32 %v4196_v33, %v4194_v44  ;;  %v4382_v20 = vrot.slane %v5284_v17, 1  ;;  %v4383_v8 = vrot.slane %v6884_v28, 1 }
  0xee   : >> { %v4189_v15 = vrot.slane %v4187_v29, 1  ;;  %v4202_v59 = vrot.slane %v4200_v30, 1  ;;  %v4304_v13 = vor.u32 %v4302_v45, %v4300_v60  ;;  %v4549_v30 = vshrl.u32 %v6144_v51, 16 }
  0xf0   : >> { %v4190_v42 = vor.u32 %v4189_v15, %v4185_v35  ;;  %v4385_v15 = vrot.slane %v6905_v50, 1 }
  0xf2   : >> { %v4195_v55 = vsel %vm407_vm1, %v4190_v42, %v4194_v44  ;;  %v4386_v44 = vsel %vm606_vm2, %v4383_v8, %v4385_v15 }
  0xf5   : >> { %5718 = vmatmul.mubr.msk.bf16.vlgmr.msra.gmra.mrb[0].mxu0 %vm259_vm0, %v3927_v5  ;;  %v5043_v5 = vcombine.low %v5036_v56, %v6145_v1 }
  0xf6   : >> { %5722 = vmatpush3.bf16.msra.mxu0 %v6110_v23  ;;  %5723 = vmatprep.mubr.msk.bf16.mxu0 %vm259_vm0, %v6114_v6  ;;  %v6135_v23 = vld [vmem:[%s7058_s2 + $0xb0] sm:$0xff]   ;;  %v4203_v6 = vsel %vm407_vm1, %v4198_v58, %v4202_v59 }
  0xf7   : >> { %5580 = vmatmul.mubr.msk.bf16.vlgmr.msra.gmra.mrb[0].mxu1 %vm259_vm0, %v1870_v18  ;;  %5727 = vmatprep.subr.bf16.mxu0 %v6115_v14  ;;  %v6130_v18 = vld [vmem:[%s6341_s11 + $0x44] sm:$0xff]   ;;  %v2300_v53 = vshll.u32 %v5043_v5, 16  ;;  %v2298_v38 = vshrl.u32 %v5043_v5, 16 }
  0xf8   : >> { %5584 = vmatpush3.bf16.msra.mxu1 %v6117_v63  ;;  %5585 = vmatprep.mubr.msk.bf16.mxu1 %vm259_vm0, %v1945_v32  ;;  %v4291_v63 = vshrl.u32 %v5275_v46, 16 }
  0xf9   : >> { %5589 = vmatprep.subr.bf16.mxu1 %v6122_v41  ;;  %v2302_v43 = vrot.slane %v2300_v53, 1 }
  0xfa   : >> { %v4296_v54 = vor.u32 %v4295_v9, %v4291_v63  ;;  %v4552_v63 = vshll.u32 %v6144_v51, 16 }
  0xfc   : >> { %v4301_v32 = vsel %vm407_vm1, %v4296_v54, %v4300_v60  ;;  %v4554_v28 = vrot.slane %v4552_v63, 2 }
 0x101   : >> { %5724 = vmatmul.mubr.msk.bf16.vlgmr.msra.gmra.mrb[0].mxu0 %vm259_vm0, %v6116_v19 }
 0x102   : >> { %5728 = vmatpush3.bf16.msra.mxu0 %v6115_v14  ;;  %5729 = vmatprep.mubr.msk.bf16.mxu0 %vm259_vm0, %v6119_v24  ;;  %v6932_v14 = vld [vmem:[%s6334_s7 + $0x88] ss:$0 sps:$4 sm:$0x11]   ;;  %v2303_v24 = vor.u32 %v2302_v43, %v2298_v38 }
 0x103   : >> { %5586 = vmatmul.mubr.msk.bf16.vlgmr.msra.gmra.mrb[0].mxu1 %vm259_vm0, %v1947_v7  ;;  %5733 = vmatprep.subr.bf16.mxu0 %v6120_v10  ;;  %v4306_v62 = vshll.u32 %v6932_v14, 16  ;;  %v4384_v7 = vsel %vm606_vm2, %v4382_v20, %v4383_v8  ;;  %v4462_v31 = vrot.slane %v6932_v14, 1 }
 0x104   : >> { %5590 = vmatpush3.bf16.msra.mxu1 %v6122_v41  ;;  %5591 = vmatprep.mubr.msk.bf16.mxu1 %vm259_vm0, %v2031_v26  ;;  %v6133_v41 = vld [vmem:[%s7058_s2 + $0x170] sm:$0xff]  }
 0x105   : >> { %5595 = vmatprep.subr.bf16.mxu1 %v6128_v34  ;;  %v4308_v19 = vrot.slane %v4306_v62, 1 }
 0x107   : >> { %v4309_v29 = vsel %vm407_vm1, %v4304_v13, %v4308_v19 }
 0x10d   : >> { %5730 = vmatmul.mubr.msk.bf16.vlgmr.msra.gmra.mrb[0].mxu0 %vm259_vm0, %v6121_v49  ;;  %v4540_v49 = vshll.u32 %v5284_v17, 16 }
 0x10e   : >> { %5734 = vmatpush3.bf16.msra.mxu0 %v6120_v10  ;;  %5735 = vmatprep.mubr.msk.bf16.mxu0 %vm259_vm0, %v4195_v55  ;;  %v2307_v10 = vrot.slane %v2305_v2, 1  ;;  %v5291_v2 = vcombine.low %v5288_v48, %v6898_v25  ;;  %v6143_v25 = vld [vmem:[%s7058_s2 + $0x180] sm:$0xff]   ;;  %v4544_v55 = vrot.slane %v4196_v33, 1  ;;  %v4551_v33 = vrot.slane %v4549_v30, 1 }
 0x10f   : >> { %5592 = vmatmul.mubr.msk.bf16.vlgmr.msra.gmra.mrb[0].mxu1 %vm259_vm0, %v2040_v39  ;;  %5739 = vmatprep.subr.bf16.mxu0 %v6126_v40 }
 0x110   : >> { %5596 = vmatpush3.bf16.msra.mxu1 %v6128_v34  ;;  %5597 = vmatprep.mubr.msk.bf16.mxu1 %vm259_vm0, %v6129_v57  ;;  %v2308_v26 = vsel %vm407_vm1, %v2303_v24, %v2307_v10  ;;  %v6146_v34 = vld [vmem:[%s6341_s11 + $0x4c] ss:$0 sps:$4 sm:$0x11]   ;;  %v4459_v27 = vrot.slane %v5291_v2, 1  ;;  %v2311_v11 = vor.u32 %v2309_v3, %v2307_v10  ;;  %v4542_v3 = vrot.slane %v4540_v49, 2  ;;  %s5320_s11 = sshll.u32 %s6217_s14, 4 }
 0x111   : >> { %5601 = vmatprep.subr.bf16.mxu1 %v6135_v23  ;;  %v2313_v35 = vshll.u32 %v6146_v34, 16  ;;  %s4654_s10 = scalar_lea.vmem %s205_s13, %s5320_s11 [#allocation2]  ;;  %s223_s14 = sadd.s32 1, %s6217_s14  }
 0x112   : >> { %v4461_v46 = vsel %vm606_vm2, %v4459_v27, %v4460_v37  ;;  %v4543_v39 = vor.u32 %v4542_v3, %v4539_v22  ;;  %p220_p11 = scmp.ge.s32.totalorder %s223_s14, 32  }
 0x113   : >> { %v2315_v42 = vrot.slane %v2313_v35, 1  ;;  %s5321_s20 = sshll.u32 (%p220_p11), %s6268_s19, 13  ;;  %s4674_s29 = sshll.u32 (%p220_p11), %s205_s13, 4  ;;  %s7011_s29 = int_to_ptr.vmem [resolvable:$true] %s4674_s29 }
 0x114   : > { %s7007_s28 = scalar_lea.hbm (%p220_p11), %s7060_s4, %s5321_s20  ;;  %s7015_s14 = scalar_lea.sflag (%p220_p11), [#allocation3], %s203_s27 }
 0x115   : >> { %v2316_v50 = vsel %vm407_vm1, %v2311_v11, %v2315_v42  ;;  %s6147_s9 = scalar_lea.vmem (%p220_p11), %s7011_s29, 8192  ;;  %s6219_s19 = smov (%p220_p11), [#allocation2]  }
 0x116   : > { %p6148_p12 = scmp.ne.s32.totalorder (%p220_p11), %s7011_s29, %s6147_s9  ;;  %s6151_s12 = sshll.u32 (%p220_p11), %s6219_s19, 4  ;;  %s6152_s12 = int_to_ptr.vmem [resolvable:$false] %s6151_s12 }
 0x117   : > { %s6153_s5 = scalar_lea.vmem (%p220_p11), %s6152_s12, 16384  ;;  %p6154_p1 = scmp.lt.s32.totalorder (%p220_p11), %s7011_s29, %s6152_s12 }
 0x118   : > { %p6149_p13 = pnand (%p220_p11), %p6148_p12, %p6285_p5  ;;  %p6155_p2 = scmp.lt.s32.totalorder (%p220_p11), %s6153_s5, %s6147_s9 }
 0x119   : >> { %5736 = vmatmul.mubr.msk.bf16.vlgmr.msra.gmra.mrb[0].mxu0 %vm259_vm0, %v4203_v6 }
 0x11a   : >> { %5740 = vmatpush3.bf16.msra.mxu0 %v6126_v40  ;;  %5741 = vmatprep.mubr.msk.bf16.mxu0 %vm259_vm0, %v4301_v32  ;;  %v4545_v40 = vrot.slane %v4192_v21, 2  ;;  %v4555_v21 = vor.u32 %v4554_v28, %v4551_v33  ;;  %p6150_p0 = pneg (%p220_p11), %p6149_p13  ;;  %p6156_p3 = por (%p220_p11), %p6155_p2, %p6154_p1 }
 0x11b   : >> { %5598 = vmatmul.mubr.msk.bf16.vlgmr.msra.gmra.mrb[0].mxu1 %vm259_vm0, %v6130_v18  ;;  %5745 = vmatprep.subr.bf16.mxu0 %v6133_v41 }
 0x11c   : >> { %5602 = vmatpush3.bf16.msra.mxu1 %v6135_v23  ;;  %5603 = vmatprep.mubr.msk.bf16.mxu1 %vm259_vm0, %v6136_v4  ;;  %v4546_v57 = vor.u32 %v4545_v40, %v4544_v55  ;;  %v4463_v23 = vsel %vm606_vm2, %v4460_v37, %v4462_v31  ;;  %p6157_p4 = pnand (%p220_p11), %p6156_p3, %p6150_p0 }
 0x11d   : >> { %5607 = vmatprep.subr.bf16.mxu1 %v6140_v61 }
 0x11e   : >> { %v4547_v9 = vsel %vm761_vm3, %v4543_v39, %v4546_v57  ;;  %v4556_v52 = vsel %vm761_vm3, %v4546_v57, %v4555_v21 }
 0x125   : >> { %5742 = vmatmul.mubr.msk.bf16.vlgmr.msra.gmra.mrb[0].mxu0 %vm259_vm0, %v4309_v29 }
 0x126   : >> { %5746 = vmatpush3.bf16.msra.mxu0 %v6133_v41  ;;  %5747 = vmatprep.mubr.msk.bf16.mxu0 %vm259_vm0, %v4384_v7 }
 0x127   : >> { %5604 = vmatmul.mubr.msk.bf16.vlgmr.msra.gmra.mrb[0].mxu1 %vm259_vm0, %v6137_v16  ;;  %5751 = vmatprep.subr.bf16.mxu0 %v6139_v36 }
 0x128   : >> { %5608 = vmatpush3.bf16.msra.mxu1 %v6140_v61  ;;  %5609 = vmatprep.mubr.msk.bf16.mxu1 %vm259_vm0, %v2308_v26 }
 0x131   : >> { %5748 = vmatmul.mubr.msk.bf16.vlgmr.msra.gmra.mrb[0].mxu0 %vm259_vm0, %v4386_v44 }
 0x132   : >> { %5752 = vmatpush3.bf16.msra.mxu0 %v6139_v36  ;;  %5753 = vmatprep.mubr.msk.bf16.mxu0 %vm259_vm0, %v4461_v46 }
 0x133   : >> { %5610 = vmatmul.mubr.msk.bf16.vlgmr.msra.gmra.mrb[0].mxu1 %vm259_vm0, %v2316_v50  ;;  %5757 = vmatprep.subr.bf16.mxu0 %v6143_v25 }
 0x13d   : >> { %5754 = vmatmul.mubr.msk.bf16.vlgmr.msra.gmra.mrb[0].mxu0 %vm259_vm0, %v4463_v23 }
 0x13e   : >> { %5758 = vmatpush3.bf16.msra.mxu0 %v6143_v25  ;;  %5759 = vmatprep.mubr.msk.bf16.mxu0 %vm259_vm0, %v4547_v9 }
 0x149   : >> { %5760 = vmatmul.mubr.msk.bf16.vlgmr.msra.gmra.mrb[0].mxu0 %vm259_vm0, %v4556_v52 }
 0x206   : >> { %v5611_v58 = vpop.f32.mrb[0].mxu1 }
 0x207   : >> { %v2363_v59 = vpop.f32.mrb[1].mxu1 }
 0x208   : >> { %v5612_v56 = vpop.f32.mrb[2].mxu1 }
 0x209   : >> { %v2366_v54 = vpop.f32.mrb[3].mxu1 }
 0x21c   : >> { %v5761_v60 = vpop.f32.mrb[0].mxu0 }
 0x21d   : >> { %v5763_v1 = vadd.f32 %v5761_v60, %v5611_v58  ;;  %v4603_v5 = vpop.f32.mrb[1].mxu0 }
 0x21e   : >> { %v5764_v6 = vadd.f32 %v4603_v5, %v2363_v59  ;;  %v5762_v14 = vpop.f32.mrb[2].mxu0 }
 0x21f   : >> { %v4630_v18 = vadd.f32 %v5763_v1, %v6300_v0  ;;  %v5765_v32 = vadd.f32 %v5762_v14, %v5612_v56  ;;  %v4606_v41 = vpop.f32.mrb[3].mxu0 }
 0x220   : >> { %v4628_v4 = vadd.f32 %v5764_v6, %v6300_v0  ;;  %v5766_v12 = vadd.f32 %v4606_v41, %v2366_v54 }
 0x221   : >> { %v4634_v61 = vmax.f32 %v4630_v18, 0.0  ;;  %v4631_v53 = vadd.f32 %v5765_v32, %v6300_v0 }
 0x222   : >> { %v4632_v45 = vmax.f32 %v4628_v4, 0.0  ;;  %v4629_v62 = vadd.f32 %v5766_v12, %v6300_v0  ;;  %222 = sbr.rel (!%p220_p11) target bundleno = 26 (0x1a), region = 144 }
 0x223   : >> { %v5318_v17 = vpack.c.bf16 %v4634_v61, %v4634_v61  ;;  %v4635_v38 = vmax.f32 %v4631_v53, 0.0 }
 0x224   : >> { %v5316_v43 = vpack.c.bf16 %v4632_v45, %v4632_v45  ;;  %v4633_v13 = vmax.f32 %v4629_v62, 0.0 }
 0x225   : >> { %4658 = vst.msk [vmem:[%s4654_s10 + $0x8] sm:$0xf] %vm4655_vm4, %v5318_v17  ;;  %v5319_v19 = vpack.c.bf16 %v4635_v38, %v4635_v38 }
 0x226   : >> { %4656 = vst.msk [vmem:[%s4654_s10] sm:$0xf] %vm4655_vm4, %v5316_v43  ;;  %v5317_v20 = vpack.c.bf16 %v4633_v13, %v4633_v13 }
 0x227   : >> { %4659 = vst.msk [vmem:[%s4654_s10 + $0xc] sm:$0xf] %vm4655_vm4, %v5319_v19 }
 0x228   : >> { %4657 = vst.msk [vmem:[%s4654_s10 + $0x4] sm:$0xf] %vm4655_vm4, %v5317_v20 }
 0x229   : > { %6160 = shalt.err (!%p6157_p4)
}
 0x22a   : > { %s6161_s27 = scalar_lea.hbm %s7007_s28, 8192  ;;  %s6165_s6 = scalar_lea.hbm %s7060_s4, 32768 }
 0x22b   : > { %p6162_p7 = scmp.ne.s32.totalorder %s7007_s28, %s6161_s27  ;;  %p6166_p10 = scmp.lt.u32.totalorder %s7007_s28, %s7060_s4 }
 0x22c   : > { %p6167_p11 = scmp.lt.u32.totalorder %s6165_s6, %s6161_s27  ;;  %p6169_p13 = scmp.lt.u32.totalorder %s6161_s27, %s7007_s28 }
 0x22d   : > { %p6163_p8 = pnand %p6162_p7, %p6285_p5 }
 0x22e   : > { %p6168_p12 = por %p6167_p11, %p6166_p10 }
 0x22f   : > { %p6164_p9 = pneg %p6163_p8 }
 0x230   : > { %p6170_p0 = por %p6169_p13, %p6168_p12 }
 0x232   : > { %p6171_p1 = pnand %p6170_p0, %p6164_p9 }
 0x234   : > { %6174 = shalt.err (!%p6171_p1)
}
 0x235   : > { %s6220_s11 = smov 64   ;;  %s6221_s10 = smov 4  }
 0x236   : > { %5956 = dma.vmem_to_hbm [thread:$0]  (%p6285_p5), %s7011_s29, 8192, %s7007_s28, %s7015_s14, %s6220_s11, %s6220_s11, %s6221_s10  }
 0x237 PF: > { %p5962_p2 = scmp.ge.s32.totalorder %s6213_s18, 2  ;;  %s4689_s20 = sand.u32 1, %s6201_s15  }
 0x238   : > { %s4690_s22 = scalar_lea.sflag [#allocation3], %s4689_s20 }
 0x239   : > { %p5959_p3 = pnand %p5962_p2, %p6289_p6 }
 0x23b   : > { %6196 = dma.done.wait (!%p5959_p3), %s4690_s22, 8192  }
 0x23c   : > { %6198 = vsyncadd (!%p5959_p3), %s4690_s22, 4294959104  ;;  %p14_p4 = scmp.ge.s32.totalorder %s6272_s21, 6   ;;  %s7063_s15 = smov %s6205_s16 }
 0x23d   : > { %s7064_s16 = smov %s6209_s17  ;;  %s7065_s17 = smov %s6283_s24 }
 0x23e   : > { %s7066_s18 = smov %s6272_s21  ;;  %16 = sbr.rel (!%p14_p4) target bundleno = 3 (0x3), region = 155 }
 0x245   :  { %4695 = vsyncpa [#allocation3], 1 }
 0x246   :  { %4697 = vsyncpa [#allocation3 + $0x1], 1 }

</bundles_post_ra>
